<compile_context>
chip_gen: v6e
topology: v6e:2x2x1
jax: 0.10.0
libtpu: 0.0.40
codegen_flags: <defaults>
</compile_context>

<pallas_src>
import math

import jax
import jax.numpy as jnp
from jax.experimental import pallas as pl
from jax.experimental.pallas import tpu as pltpu

# ----------------------------- model config (small) -----------------------------
VOCAB = 100
MAX_POS = 16
HIDDEN = 32
NUM_HEADS = 2
HEAD_DIM = HIDDEN // NUM_HEADS
INTERMEDIATE = 64
NUM_LAYERS = 2
NUM_CLASSES = 3
BATCH = 2
SEQ = 8
LN_EPS = 1e-12
LANE_PAD = 128  # lane-dense width for pooler/classifier epilogue outputs

_VMEM = pl.BlockSpec(memory_space=pltpu.MemorySpace.VMEM)


# ----------------------------- in-kernel helpers -----------------------------
def _layernorm(x, g, b):
    mu = jnp.mean(x, axis=-1, keepdims=True)
    xc = x - mu
    var = jnp.mean(xc * xc, axis=-1, keepdims=True)
    return xc * jax.lax.rsqrt(var + LN_EPS) * g + b


def _gelu(y):
    # TODO(synk): tanh-approx GELU (HF BERT default is erf-GELU); difference is ~1e-3.
    return 0.5 * y * (1.0 + jnp.tanh(0.7978845608028654 * (y + 0.044715 * y * y * y)))


def _softmax_rows(s):
    s = s - jnp.max(s, axis=-1, keepdims=True)
    p = jnp.exp(s)
    return p * pl.reciprocal(jnp.sum(p, axis=-1, keepdims=True), approx=True)


# ----------------------------- fused forward kernel -----------------------------
def _bert_fused_kernel(emb_ref, mask_ref, emb_ln_g_ref, emb_ln_b_ref,
                       wqkv_ref, bqkv_ref, wo_ref, bo_ref, ln1_g_ref, ln1_b_ref,
                       wi_ref, bi_ref, wo2_ref, bo2_ref, ln2_g_ref, ln2_b_ref,
                       poolw_ref, poolb_ref, clsw_ref, clsb_ref,
                       pooled_ref, logits_ref):
    scale = 1.0 / math.sqrt(HEAD_DIM)

    # --- embedding LayerNorm (no residual / no zero buffer) ---
    x = _layernorm(emb_ref[...], emb_ln_g_ref[...], emb_ln_b_ref[...])   # [B*S, H]

    # --- additive attention-mask bias built in-kernel from the [B, S] mask ---
    mask_bias = (1.0 - mask_ref[...]) * -10000.0                         # [B, S]

    # --- encoder layers (fully unrolled; all weights VMEM-resident) ---
    for l in range(NUM_LAYERS):
        # fused QKV projection: one [B*S, H] @ [H, 3H] matmul
        qkv = jnp.dot(x, wqkv_ref[l], preferred_element_type=jnp.float32) + bqkv_ref[l]

        # attention with 2-D dots only; heads/batch handled by static slicing
        ctx_rows = []
        for b in range(BATCH):
            rows = qkv[b * SEQ:(b + 1) * SEQ, :]                   # [S, 3H]
            bias_b = mask_bias[b:b + 1, :]                         # [1, S] broadcast over queries
            head_out = []
            for h in range(NUM_HEADS):
                q = rows[:, h * HEAD_DIM:(h + 1) * HEAD_DIM]
                k = rows[:, HIDDEN + h * HEAD_DIM:HIDDEN + (h + 1) * HEAD_DIM]
                v = rows[:, 2 * HIDDEN + h * HEAD_DIM:2 * HIDDEN + (h + 1) * HEAD_DIM]
                s = jax.lax.dot_general(q, k, (((1,), (1,)), ((), ())),
                                        preferred_element_type=jnp.float32) * scale
                p = _softmax_rows(s + bias_b)                      # [S, S]
                head_out.append(jnp.dot(p, v, preferred_element_type=jnp.float32))  # [S, Dh]
            ctx_rows.append(jnp.concatenate(head_out, axis=-1))    # [S, H]
        ctx = jnp.concatenate(ctx_rows, axis=0)                    # [B*S, H]

        attn_out = jnp.dot(ctx, wo_ref[l], preferred_element_type=jnp.float32) + bo_ref[l]
        x = _layernorm(attn_out + x, ln1_g_ref[l], ln1_b_ref[l])

        inter = _gelu(jnp.dot(x, wi_ref[l], preferred_element_type=jnp.float32) + bi_ref[l])
        ffn_out = jnp.dot(inter, wo2_ref[l], preferred_element_type=jnp.float32) + bo2_ref[l]
        x = _layernorm(ffn_out + x, ln2_g_ref[l], ln2_b_ref[l])

    # --- pooler + classifier epilogue (128-lane padded weights -> lane-dense stores) ---
    cls_tok = jnp.concatenate([x[b * SEQ:b * SEQ + 1, :] for b in range(BATCH)], axis=0)  # [B, H]
    pooled = jnp.tanh(jnp.dot(cls_tok, poolw_ref[...], preferred_element_type=jnp.float32)
                      + poolb_ref[...])                                                    # [B, 128]
    logits = jnp.dot(pooled, clsw_ref[...], preferred_element_type=jnp.float32) + clsb_ref[...]

    pooled_ref[...] = pooled
    logits_ref[...] = logits


# ----------------------------- parameter init -----------------------------
def init_params(key):
    def nrm(k, shape):
        return 0.02 * jax.random.normal(k, shape, dtype=jnp.float32)

    keys = iter(jax.random.split(key, 64))
    params = {
        "word_emb": nrm(next(keys), (VOCAB, HIDDEN)),
        "pos_emb": nrm(next(keys), (MAX_POS, HIDDEN)),
        "type_emb": nrm(next(keys), (2, HIDDEN)),
        "emb_ln_g": jnp.ones((HIDDEN,), jnp.float32),
        "emb_ln_b": jnp.zeros((HIDDEN,), jnp.float32),
        "layers": [],
        "pooler_w": nrm(next(keys), (HIDDEN, HIDDEN)),
        "pooler_b": jnp.zeros((HIDDEN,), jnp.float32),
        "cls_w": nrm(next(keys), (HIDDEN, NUM_CLASSES)),
        "cls_b": jnp.zeros((NUM_CLASSES,), jnp.float32),
    }
    for _ in range(NUM_LAYERS):
        layer = {
            "wq": nrm(next(keys), (HIDDEN, HIDDEN)), "bq": jnp.zeros((HIDDEN,), jnp.float32),
            "wk": nrm(next(keys), (HIDDEN, HIDDEN)), "bk": jnp.zeros((HIDDEN,), jnp.float32),
            "wv": nrm(next(keys), (HIDDEN, HIDDEN)), "bv": jnp.zeros((HIDDEN,), jnp.float32),
            "wo": nrm(next(keys), (HIDDEN, HIDDEN)), "bo": jnp.zeros((HIDDEN,), jnp.float32),
            "ln1_g": jnp.ones((HIDDEN,), jnp.float32), "ln1_b": jnp.zeros((HIDDEN,), jnp.float32),
            "wi": nrm(next(keys), (HIDDEN, INTERMEDIATE)), "bi": jnp.zeros((INTERMEDIATE,), jnp.float32),
            "wo2": nrm(next(keys), (INTERMEDIATE, HIDDEN)), "bo2": jnp.zeros((HIDDEN,), jnp.float32),
            "ln2_g": jnp.ones((HIDDEN,), jnp.float32), "ln2_b": jnp.zeros((HIDDEN,), jnp.float32),
        }
        params["layers"].append(layer)
    return params


# ----------------------------- forward pass (wrapper) -----------------------------
def bert_classifier_forward(params, input_ids, attention_mask):
    B, S = input_ids.shape
    H = HIDDEN

    # --- embeddings (data-dependent gather stays as JAX glue) ---
    we = jnp.take(params["word_emb"], input_ids, axis=0)              # [B,S,H]
    pe = params["pos_emb"][:S][None, :, :]                            # [1,S,H]
    te = params["type_emb"][0][None, None, :]                         # token_type_ids == 0
    emb = (we + pe + te).reshape(B * S, H)

    mask_f = attention_mask.astype(jnp.float32)                       # [B,S]

    # --- stack per-layer weights (fused QKV) for the single VMEM-resident kernel ---
    L = params["layers"]
    wqkv = jnp.stack([jnp.concatenate([l["wq"], l["wk"], l["wv"]], axis=1) for l in L])   # [L,H,3H]
    bqkv = jnp.stack([jnp.concatenate([l["bq"], l["bk"], l["bv"]])[None, :] for l in L])  # [L,1,3H]
    wo = jnp.stack([l["wo"] for l in L])                                                  # [L,H,H]
    bo = jnp.stack([l["bo"][None, :] for l in L])                                         # [L,1,H]
    ln1_g = jnp.stack([l["ln1_g"][None, :] for l in L])
    ln1_b = jnp.stack([l["ln1_b"][None, :] for l in L])
    wi = jnp.stack([l["wi"] for l in L])                                                  # [L,H,I]
    bi = jnp.stack([l["bi"][None, :] for l in L])                                         # [L,1,I]
    wo2 = jnp.stack([l["wo2"] for l in L])                                                # [L,I,H]
    bo2 = jnp.stack([l["bo2"][None, :] for l in L])
    ln2_g = jnp.stack([l["ln2_g"][None, :] for l in L])
    ln2_b = jnp.stack([l["ln2_b"][None, :] for l in L])

    # --- pooler / classifier weights zero-padded to 128 lanes (lane-dense epilogue) ---
    poolw = jnp.zeros((H, LANE_PAD), jnp.float32).at[:, :H].set(params["pooler_w"])
    poolb = jnp.zeros((1, LANE_PAD), jnp.float32).at[0, :H].set(params["pooler_b"])
    clsw = jnp.zeros((LANE_PAD, LANE_PAD), jnp.float32).at[:H, :NUM_CLASSES].set(params["cls_w"])
    clsb = jnp.zeros((1, LANE_PAD), jnp.float32).at[0, :NUM_CLASSES].set(params["cls_b"])

    pooled_pad, logits_pad = pl.pallas_call(
        _bert_fused_kernel,
        out_shape=(jax.ShapeDtypeStruct((B, LANE_PAD), jnp.float32),
                   jax.ShapeDtypeStruct((B, LANE_PAD), jnp.float32)),
        in_specs=[_VMEM] * 20,
        out_specs=(_VMEM, _VMEM),
    )(emb, mask_f,
      params["emb_ln_g"].reshape(1, H), params["emb_ln_b"].reshape(1, H),
      wqkv, bqkv, wo, bo, ln1_g, ln1_b, wi, bi, wo2, bo2, ln2_g, ln2_b,
      poolw, poolb, clsw, clsb)

    pooled_output = pooled_pad[:, :H]
    logits = logits_pad[:, :NUM_CLASSES]
    return pooled_output, logits


# ----------------------------- main -----------------------------
if __name__ == "__main__":
    key = jax.random.PRNGKey(0)
    pkey, dkey = jax.random.split(key)
    params = init_params(pkey)

    input_ids = jax.random.randint(dkey, (BATCH, SEQ), 0, VOCAB, dtype=jnp.int32)
    attention_mask = jnp.ones((BATCH, SEQ), dtype=jnp.int32).at[1, SEQ // 2:].set(0)

    fwd = jax.jit(bert_classifier_forward)
    pooled_output, logits = fwd(params, input_ids, attention_mask)
    jax.block_until_ready((pooled_output, logits))

    assert pooled_output.shape == (BATCH, HIDDEN)
    assert logits.shape == (BATCH, NUM_CLASSES)
    print("KERNEL_OK")
</pallas_src>

<mosaic_0001>
module attributes {stable_mosaic.version = 11 : i64} {
  func.func @_bert_fused_kernel(%arg0: memref<16x32xf32, #tpu.memory_space<vmem>>, %arg1: memref<2x8xf32, #tpu.memory_space<vmem>>, %arg2: memref<1x32xf32, #tpu.memory_space<vmem>>, %arg3: memref<1x32xf32, #tpu.memory_space<vmem>>, %arg4: memref<2x32x96xf32, #tpu.memory_space<vmem>>, %arg5: memref<2x1x96xf32, #tpu.memory_space<vmem>>, %arg6: memref<2x32x32xf32, #tpu.memory_space<vmem>>, %arg7: memref<2x1x32xf32, #tpu.memory_space<vmem>>, %arg8: memref<2x1x32xf32, #tpu.memory_space<vmem>>, %arg9: memref<2x1x32xf32, #tpu.memory_space<vmem>>, %arg10: memref<2x32x64xf32, #tpu.memory_space<vmem>>, %arg11: memref<2x1x64xf32, #tpu.memory_space<vmem>>, %arg12: memref<2x64x32xf32, #tpu.memory_space<vmem>>, %arg13: memref<2x1x32xf32, #tpu.memory_space<vmem>>, %arg14: memref<2x1x32xf32, #tpu.memory_space<vmem>>, %arg15: memref<2x1x32xf32, #tpu.memory_space<vmem>>, %arg16: memref<32x128xf32, #tpu.memory_space<vmem>>, %arg17: memref<1x128xf32, #tpu.memory_space<vmem>>, %arg18: memref<128x128xf32, #tpu.memory_space<vmem>>, %arg19: memref<1x128xf32, #tpu.memory_space<vmem>>, %arg20: memref<2x128xf32, #tpu.memory_space<vmem>>, %arg21: memref<2x128xf32, #tpu.memory_space<vmem>>) attributes {dimension_semantics = [], scalar_prefetch = 0 : i64, scratch_operands = 0 : i64, tpu.core_type = #tpu.core_type<tc>} {
    %c0 = arith.constant 0 : index
    %c0_0 = arith.constant 0 : index
    %0 = vector.load %arg0[%c0, %c0_0] : memref<16x32xf32, #tpu.memory_space<vmem>>, vector<16x32xf32>
    %c0_1 = arith.constant 0 : index
    %c0_2 = arith.constant 0 : index
    %1 = vector.load %arg2[%c0_1, %c0_2] : memref<1x32xf32, #tpu.memory_space<vmem>>, vector<1x32xf32>
    %c0_3 = arith.constant 0 : index
    %c0_4 = arith.constant 0 : index
    %2 = vector.load %arg3[%c0_3, %c0_4] : memref<1x32xf32, #tpu.memory_space<vmem>>, vector<1x32xf32>
    %cst = arith.constant dense<0.000000e+00> : vector<16xf32>
    %3 = vector.multi_reduction <add>, %0, %cst [1] : vector<16x32xf32> to vector<16xf32>
    %4 = vector.shape_cast %3 : vector<16xf32> to vector<16x1xf32>
    %cst_5 = arith.constant 3.200000e+01 : f32
    %5 = vector.broadcast %cst_5 : f32 to vector<16x1xf32>
    %6 = arith.divf %4, %5 : vector<16x1xf32>
    %7 = vector.broadcast %6 : vector<16x1xf32> to vector<16x32xf32>
    %8 = arith.subf %0, %7 : vector<16x32xf32>
    %9 = arith.mulf %8, %8 : vector<16x32xf32>
    %cst_6 = arith.constant dense<0.000000e+00> : vector<16xf32>
    %10 = vector.multi_reduction <add>, %9, %cst_6 [1] : vector<16x32xf32> to vector<16xf32>
    %11 = vector.shape_cast %10 : vector<16xf32> to vector<16x1xf32>
    %cst_7 = arith.constant 3.200000e+01 : f32
    %12 = vector.broadcast %cst_7 : f32 to vector<16x1xf32>
    %13 = arith.divf %11, %12 : vector<16x1xf32>
    %cst_8 = arith.constant 9.99999996E-13 : f32
    %14 = vector.broadcast %cst_8 : f32 to vector<16x1xf32>
    %15 = arith.addf %13, %14 : vector<16x1xf32>
    %16 = math.rsqrt %15 : vector<16x1xf32>
    %17 = vector.broadcast %16 : vector<16x1xf32> to vector<16x32xf32>
    %18 = arith.mulf %8, %17 : vector<16x32xf32>
    %19 = vector.broadcast %1 : vector<1x32xf32> to vector<16x32xf32>
    %20 = arith.mulf %18, %19 : vector<16x32xf32>
    %21 = vector.broadcast %2 : vector<1x32xf32> to vector<16x32xf32>
    %22 = arith.addf %20, %21 : vector<16x32xf32>
    %c0_9 = arith.constant 0 : index
    %c0_10 = arith.constant 0 : index
    %23 = vector.load %arg1[%c0_9, %c0_10] : memref<2x8xf32, #tpu.memory_space<vmem>>, vector<2x8xf32>
    %cst_11 = arith.constant 1.000000e+00 : f32
    %24 = vector.broadcast %cst_11 : f32 to vector<2x8xf32>
    %25 = arith.subf %24, %23 : vector<2x8xf32>
    %cst_12 = arith.constant -1.000000e+04 : f32
    %26 = vector.broadcast %cst_12 : f32 to vector<2x8xf32>
    %27 = arith.mulf %25, %26 : vector<2x8xf32>
    %c0_13 = arith.constant 0 : index
    %c0_14 = arith.constant 0 : index
    %c0_15 = arith.constant 0 : index
    %28 = vector.load %arg4[%c0_13, %c0_14, %c0_15] : memref<2x32x96xf32, #tpu.memory_space<vmem>>, vector<1x32x96xf32>
    %29 = vector.shape_cast %28 : vector<1x32x96xf32> to vector<32x96xf32>
    %cst_16 = arith.constant dense<0.000000e+00> : vector<16x96xf32>
    %30 = tpu.matmul %22, %29, %cst_16 {dimension_numbers = #tpu.dot_dimension_numbers<[1], [0], [0], [1], [0, 0, 1, 1], [], []>} : vector<16x32xf32>, vector<32x96xf32>, vector<16x96xf32> -> vector<16x96xf32>
    %c0_17 = arith.constant 0 : index
    %c0_18 = arith.constant 0 : index
    %c0_19 = arith.constant 0 : index
    %31 = vector.load %arg5[%c0_17, %c0_18, %c0_19] : memref<2x1x96xf32, #tpu.memory_space<vmem>>, vector<1x1x96xf32>
    %32 = vector.shape_cast %31 : vector<1x1x96xf32> to vector<1x96xf32>
    %33 = vector.broadcast %32 : vector<1x96xf32> to vector<16x96xf32>
    %34 = arith.addf %30, %33 : vector<16x96xf32>
    %35 = vector.extract_strided_slice %34 {offsets = [0, 0], sizes = [8, 96], strides = [1, 1]} : vector<16x96xf32> to vector<8x96xf32>
    %36 = vector.extract_strided_slice %27 {offsets = [0, 0], sizes = [1, 8], strides = [1, 1]} : vector<2x8xf32> to vector<1x8xf32>
    %37 = vector.extract_strided_slice %35 {offsets = [0, 0], sizes = [8, 16], strides = [1, 1]} : vector<8x96xf32> to vector<8x16xf32>
    %38 = vector.extract_strided_slice %35 {offsets = [0, 32], sizes = [8, 16], strides = [1, 1]} : vector<8x96xf32> to vector<8x16xf32>
    %39 = vector.extract_strided_slice %35 {offsets = [0, 64], sizes = [8, 16], strides = [1, 1]} : vector<8x96xf32> to vector<8x16xf32>
    %cst_20 = arith.constant dense<0.000000e+00> : vector<8x8xf32>
    %40 = tpu.matmul %37, %38, %cst_20 {dimension_numbers = #tpu.dot_dimension_numbers<[1], [1], [0], [0], [0, 0, 1, 0], [], []>} : vector<8x16xf32>, vector<8x16xf32>, vector<8x8xf32> -> vector<8x8xf32>
    %cst_21 = arith.constant 2.500000e-01 : f32
    %41 = vector.broadcast %cst_21 : f32 to vector<8x8xf32>
    %42 = arith.mulf %40, %41 : vector<8x8xf32>
    %43 = vector.broadcast %36 : vector<1x8xf32> to vector<8x8xf32>
    %44 = arith.addf %42, %43 : vector<8x8xf32>
    %cst_22 = arith.constant dense<0xFF800000> : vector<8xf32>
    %45 = vector.multi_reduction <maximumf>, %44, %cst_22 [1] : vector<8x8xf32> to vector<8xf32>
    %46 = vector.shape_cast %45 : vector<8xf32> to vector<8x1xf32>
    %47 = vector.broadcast %46 : vector<8x1xf32> to vector<8x8xf32>
    %48 = arith.subf %44, %47 : vector<8x8xf32>
    %49 = math.exp %48 : vector<8x8xf32>
    %cst_23 = arith.constant dense<0.000000e+00> : vector<8xf32>
    %50 = vector.multi_reduction <add>, %49, %cst_23 [1] : vector<8x8xf32> to vector<8xf32>
    %51 = vector.shape_cast %50 : vector<8xf32> to vector<8x1xf32>
    %52 = tpu.reciprocal %51 {approx = true} : vector<8x1xf32> -> vector<8x1xf32>
    %53 = vector.broadcast %52 : vector<8x1xf32> to vector<8x8xf32>
    %54 = arith.mulf %49, %53 : vector<8x8xf32>
    %cst_24 = arith.constant dense<0.000000e+00> : vector<8x16xf32>
    %55 = tpu.matmul %54, %39, %cst_24 {dimension_numbers = #tpu.dot_dimension_numbers<[1], [0], [0], [1], [0, 0, 1, 1], [], []>} : vector<8x8xf32>, vector<8x16xf32>, vector<8x16xf32> -> vector<8x16xf32>
    %56 = vector.extract_strided_slice %35 {offsets = [0, 16], sizes = [8, 16], strides = [1, 1]} : vector<8x96xf32> to vector<8x16xf32>
    %57 = vector.extract_strided_slice %35 {offsets = [0, 48], sizes = [8, 16], strides = [1, 1]} : vector<8x96xf32> to vector<8x16xf32>
    %58 = vector.extract_strided_slice %35 {offsets = [0, 80], sizes = [8, 16], strides = [1, 1]} : vector<8x96xf32> to vector<8x16xf32>
    %cst_25 = arith.constant dense<0.000000e+00> : vector<8x8xf32>
    %59 = tpu.matmul %56, %57, %cst_25 {dimension_numbers = #tpu.dot_dimension_numbers<[1], [1], [0], [0], [0, 0, 1, 0], [], []>} : vector<8x16xf32>, vector<8x16xf32>, vector<8x8xf32> -> vector<8x8xf32>
    %cst_26 = arith.constant 2.500000e-01 : f32
    %60 = vector.broadcast %cst_26 : f32 to vector<8x8xf32>
    %61 = arith.mulf %59, %60 : vector<8x8xf32>
    %62 = vector.broadcast %36 : vector<1x8xf32> to vector<8x8xf32>
    %63 = arith.addf %61, %62 : vector<8x8xf32>
    %cst_27 = arith.constant dense<0xFF800000> : vector<8xf32>
    %64 = vector.multi_reduction <maximumf>, %63, %cst_27 [1] : vector<8x8xf32> to vector<8xf32>
    %65 = vector.shape_cast %64 : vector<8xf32> to vector<8x1xf32>
    %66 = vector.broadcast %65 : vector<8x1xf32> to vector<8x8xf32>
    %67 = arith.subf %63, %66 : vector<8x8xf32>
    %68 = math.exp %67 : vector<8x8xf32>
    %cst_28 = arith.constant dense<0.000000e+00> : vector<8xf32>
    %69 = vector.multi_reduction <add>, %68, %cst_28 [1] : vector<8x8xf32> to vector<8xf32>
    %70 = vector.shape_cast %69 : vector<8xf32> to vector<8x1xf32>
    %71 = tpu.reciprocal %70 {approx = true} : vector<8x1xf32> -> vector<8x1xf32>
    %72 = vector.broadcast %71 : vector<8x1xf32> to vector<8x8xf32>
    %73 = arith.mulf %68, %72 : vector<8x8xf32>
    %cst_29 = arith.constant dense<0.000000e+00> : vector<8x16xf32>
    %74 = tpu.matmul %73, %58, %cst_29 {dimension_numbers = #tpu.dot_dimension_numbers<[1], [0], [0], [1], [0, 0, 1, 1], [], []>} : vector<8x8xf32>, vector<8x16xf32>, vector<8x16xf32> -> vector<8x16xf32>
    %75 = tpu.concatenate %55, %74 in 1 : vector<8x16xf32>, vector<8x16xf32> -> vector<8x32xf32>
    %76 = vector.extract_strided_slice %34 {offsets = [8, 0], sizes = [8, 96], strides = [1, 1]} : vector<16x96xf32> to vector<8x96xf32>
    %77 = vector.extract_strided_slice %27 {offsets = [1, 0], sizes = [1, 8], strides = [1, 1]} : vector<2x8xf32> to vector<1x8xf32>
    %78 = vector.extract_strided_slice %76 {offsets = [0, 0], sizes = [8, 16], strides = [1, 1]} : vector<8x96xf32> to vector<8x16xf32>
    %79 = vector.extract_strided_slice %76 {offsets = [0, 32], sizes = [8, 16], strides = [1, 1]} : vector<8x96xf32> to vector<8x16xf32>
    %80 = vector.extract_strided_slice %76 {offsets = [0, 64], sizes = [8, 16], strides = [1, 1]} : vector<8x96xf32> to vector<8x16xf32>
    %cst_30 = arith.constant dense<0.000000e+00> : vector<8x8xf32>
    %81 = tpu.matmul %78, %79, %cst_30 {dimension_numbers = #tpu.dot_dimension_numbers<[1], [1], [0], [0], [0, 0, 1, 0], [], []>} : vector<8x16xf32>, vector<8x16xf32>, vector<8x8xf32> -> vector<8x8xf32>
    %cst_31 = arith.constant 2.500000e-01 : f32
    %82 = vector.broadcast %cst_31 : f32 to vector<8x8xf32>
    %83 = arith.mulf %81, %82 : vector<8x8xf32>
    %84 = vector.broadcast %77 : vector<1x8xf32> to vector<8x8xf32>
    %85 = arith.addf %83, %84 : vector<8x8xf32>
    %cst_32 = arith.constant dense<0xFF800000> : vector<8xf32>
    %86 = vector.multi_reduction <maximumf>, %85, %cst_32 [1] : vector<8x8xf32> to vector<8xf32>
    %87 = vector.shape_cast %86 : vector<8xf32> to vector<8x1xf32>
    %88 = vector.broadcast %87 : vector<8x1xf32> to vector<8x8xf32>
    %89 = arith.subf %85, %88 : vector<8x8xf32>
    %90 = math.exp %89 : vector<8x8xf32>
    %cst_33 = arith.constant dense<0.000000e+00> : vector<8xf32>
    %91 = vector.multi_reduction <add>, %90, %cst_33 [1] : vector<8x8xf32> to vector<8xf32>
    %92 = vector.shape_cast %91 : vector<8xf32> to vector<8x1xf32>
    %93 = tpu.reciprocal %92 {approx = true} : vector<8x1xf32> -> vector<8x1xf32>
    %94 = vector.broadcast %93 : vector<8x1xf32> to vector<8x8xf32>
    %95 = arith.mulf %90, %94 : vector<8x8xf32>
    %cst_34 = arith.constant dense<0.000000e+00> : vector<8x16xf32>
    %96 = tpu.matmul %95, %80, %cst_34 {dimension_numbers = #tpu.dot_dimension_numbers<[1], [0], [0], [1], [0, 0, 1, 1], [], []>} : vector<8x8xf32>, vector<8x16xf32>, vector<8x16xf32> -> vector<8x16xf32>
    %97 = vector.extract_strided_slice %76 {offsets = [0, 16], sizes = [8, 16], strides = [1, 1]} : vector<8x96xf32> to vector<8x16xf32>
    %98 = vector.extract_strided_slice %76 {offsets = [0, 48], sizes = [8, 16], strides = [1, 1]} : vector<8x96xf32> to vector<8x16xf32>
    %99 = vector.extract_strided_slice %76 {offsets = [0, 80], sizes = [8, 16], strides = [1, 1]} : vector<8x96xf32> to vector<8x16xf32>
    %cst_35 = arith.constant dense<0.000000e+00> : vector<8x8xf32>
    %100 = tpu.matmul %97, %98, %cst_35 {dimension_numbers = #tpu.dot_dimension_numbers<[1], [1], [0], [0], [0, 0, 1, 0], [], []>} : vector<8x16xf32>, vector<8x16xf32>, vector<8x8xf32> -> vector<8x8xf32>
    %cst_36 = arith.constant 2.500000e-01 : f32
    %101 = vector.broadcast %cst_36 : f32 to vector<8x8xf32>
    %102 = arith.mulf %100, %101 : vector<8x8xf32>
    %103 = vector.broadcast %77 : vector<1x8xf32> to vector<8x8xf32>
    %104 = arith.addf %102, %103 : vector<8x8xf32>
    %cst_37 = arith.constant dense<0xFF800000> : vector<8xf32>
    %105 = vector.multi_reduction <maximumf>, %104, %cst_37 [1] : vector<8x8xf32> to vector<8xf32>
    %106 = vector.shape_cast %105 : vector<8xf32> to vector<8x1xf32>
    %107 = vector.broadcast %106 : vector<8x1xf32> to vector<8x8xf32>
    %108 = arith.subf %104, %107 : vector<8x8xf32>
    %109 = math.exp %108 : vector<8x8xf32>
    %cst_38 = arith.constant dense<0.000000e+00> : vector<8xf32>
    %110 = vector.multi_reduction <add>, %109, %cst_38 [1] : vector<8x8xf32> to vector<8xf32>
    %111 = vector.shape_cast %110 : vector<8xf32> to vector<8x1xf32>
    %112 = tpu.reciprocal %111 {approx = true} : vector<8x1xf32> -> vector<8x1xf32>
    %113 = vector.broadcast %112 : vector<8x1xf32> to vector<8x8xf32>
    %114 = arith.mulf %109, %113 : vector<8x8xf32>
    %cst_39 = arith.constant dense<0.000000e+00> : vector<8x16xf32>
    %115 = tpu.matmul %114, %99, %cst_39 {dimension_numbers = #tpu.dot_dimension_numbers<[1], [0], [0], [1], [0, 0, 1, 1], [], []>} : vector<8x8xf32>, vector<8x16xf32>, vector<8x16xf32> -> vector<8x16xf32>
    %116 = tpu.concatenate %96, %115 in 1 : vector<8x16xf32>, vector<8x16xf32> -> vector<8x32xf32>
    %117 = tpu.concatenate %75, %116 in 0 : vector<8x32xf32>, vector<8x32xf32> -> vector<16x32xf32>
    %c0_40 = arith.constant 0 : index
    %c0_41 = arith.constant 0 : index
    %c0_42 = arith.constant 0 : index
    %118 = vector.load %arg6[%c0_40, %c0_41, %c0_42] : memref<2x32x32xf32, #tpu.memory_space<vmem>>, vector<1x32x32xf32>
    %119 = vector.shape_cast %118 : vector<1x32x32xf32> to vector<32x32xf32>
    %cst_43 = arith.constant dense<0.000000e+00> : vector<16x32xf32>
    %120 = tpu.matmul %117, %119, %cst_43 {dimension_numbers = #tpu.dot_dimension_numbers<[1], [0], [0], [1], [0, 0, 1, 1], [], []>} : vector<16x32xf32>, vector<32x32xf32>, vector<16x32xf32> -> vector<16x32xf32>
    %c0_44 = arith.constant 0 : index
    %c0_45 = arith.constant 0 : index
    %c0_46 = arith.constant 0 : index
    %121 = vector.load %arg7[%c0_44, %c0_45, %c0_46] : memref<2x1x32xf32, #tpu.memory_space<vmem>>, vector<1x1x32xf32>
    %122 = vector.shape_cast %121 : vector<1x1x32xf32> to vector<1x32xf32>
    %123 = vector.broadcast %122 : vector<1x32xf32> to vector<16x32xf32>
    %124 = arith.addf %120, %123 : vector<16x32xf32>
    %125 = arith.addf %124, %22 : vector<16x32xf32>
    %c0_47 = arith.constant 0 : index
    %c0_48 = arith.constant 0 : index
    %c0_49 = arith.constant 0 : index
    %126 = vector.load %arg8[%c0_47, %c0_48, %c0_49] : memref<2x1x32xf32, #tpu.memory_space<vmem>>, vector<1x1x32xf32>
    %127 = vector.shape_cast %126 : vector<1x1x32xf32> to vector<1x32xf32>
    %c0_50 = arith.constant 0 : index
    %c0_51 = arith.constant 0 : index
    %c0_52 = arith.constant 0 : index
    %128 = vector.load %arg9[%c0_50, %c0_51, %c0_52] : memref<2x1x32xf32, #tpu.memory_space<vmem>>, vector<1x1x32xf32>
    %129 = vector.shape_cast %128 : vector<1x1x32xf32> to vector<1x32xf32>
    %cst_53 = arith.constant dense<0.000000e+00> : vector<16xf32>
    %130 = vector.multi_reduction <add>, %125, %cst_53 [1] : vector<16x32xf32> to vector<16xf32>
    %131 = vector.shape_cast %130 : vector<16xf32> to vector<16x1xf32>
    %cst_54 = arith.constant 3.200000e+01 : f32
    %132 = vector.broadcast %cst_54 : f32 to vector<16x1xf32>
    %133 = arith.divf %131, %132 : vector<16x1xf32>
    %134 = vector.broadcast %133 : vector<16x1xf32> to vector<16x32xf32>
    %135 = arith.subf %125, %134 : vector<16x32xf32>
    %136 = arith.mulf %135, %135 : vector<16x32xf32>
    %cst_55 = arith.constant dense<0.000000e+00> : vector<16xf32>
    %137 = vector.multi_reduction <add>, %136, %cst_55 [1] : vector<16x32xf32> to vector<16xf32>
    %138 = vector.shape_cast %137 : vector<16xf32> to vector<16x1xf32>
    %cst_56 = arith.constant 3.200000e+01 : f32
    %139 = vector.broadcast %cst_56 : f32 to vector<16x1xf32>
    %140 = arith.divf %138, %139 : vector<16x1xf32>
    %cst_57 = arith.constant 9.99999996E-13 : f32
    %141 = vector.broadcast %cst_57 : f32 to vector<16x1xf32>
    %142 = arith.addf %140, %141 : vector<16x1xf32>
    %143 = math.rsqrt %142 : vector<16x1xf32>
    %144 = vector.broadcast %143 : vector<16x1xf32> to vector<16x32xf32>
    %145 = arith.mulf %135, %144 : vector<16x32xf32>
    %146 = vector.broadcast %127 : vector<1x32xf32> to vector<16x32xf32>
    %147 = arith.mulf %145, %146 : vector<16x32xf32>
    %148 = vector.broadcast %129 : vector<1x32xf32> to vector<16x32xf32>
    %149 = arith.addf %147, %148 : vector<16x32xf32>
    %c0_58 = arith.constant 0 : index
    %c0_59 = arith.constant 0 : index
    %c0_60 = arith.constant 0 : index
    %150 = vector.load %arg10[%c0_58, %c0_59, %c0_60] : memref<2x32x64xf32, #tpu.memory_space<vmem>>, vector<1x32x64xf32>
    %151 = vector.shape_cast %150 : vector<1x32x64xf32> to vector<32x64xf32>
    %cst_61 = arith.constant dense<0.000000e+00> : vector<16x64xf32>
    %152 = tpu.matmul %149, %151, %cst_61 {dimension_numbers = #tpu.dot_dimension_numbers<[1], [0], [0], [1], [0, 0, 1, 1], [], []>} : vector<16x32xf32>, vector<32x64xf32>, vector<16x64xf32> -> vector<16x64xf32>
    %c0_62 = arith.constant 0 : index
    %c0_63 = arith.constant 0 : index
    %c0_64 = arith.constant 0 : index
    %153 = vector.load %arg11[%c0_62, %c0_63, %c0_64] : memref<2x1x64xf32, #tpu.memory_space<vmem>>, vector<1x1x64xf32>
    %154 = vector.shape_cast %153 : vector<1x1x64xf32> to vector<1x64xf32>
    %155 = vector.broadcast %154 : vector<1x64xf32> to vector<16x64xf32>
    %156 = arith.addf %152, %155 : vector<16x64xf32>
    %cst_65 = arith.constant 5.000000e-01 : f32
    %157 = vector.broadcast %cst_65 : f32 to vector<16x64xf32>
    %158 = arith.mulf %157, %156 : vector<16x64xf32>
    %cst_66 = arith.constant 4.471500e-02 : f32
    %159 = vector.broadcast %cst_66 : f32 to vector<16x64xf32>
    %160 = arith.mulf %159, %156 : vector<16x64xf32>
    %161 = arith.mulf %160, %156 : vector<16x64xf32>
    %162 = arith.mulf %161, %156 : vector<16x64xf32>
    %163 = arith.addf %156, %162 : vector<16x64xf32>
    %cst_67 = arith.constant 0.797884583 : f32
    %164 = vector.broadcast %cst_67 : f32 to vector<16x64xf32>
    %165 = arith.mulf %164, %163 : vector<16x64xf32>
    %166 = math.tanh %165 : vector<16x64xf32>
    %cst_68 = arith.constant 1.000000e+00 : f32
    %167 = vector.broadcast %cst_68 : f32 to vector<16x64xf32>
    %168 = arith.addf %167, %166 : vector<16x64xf32>
    %169 = arith.mulf %158, %168 : vector<16x64xf32>
    %c0_69 = arith.constant 0 : index
    %c0_70 = arith.constant 0 : index
    %c0_71 = arith.constant 0 : index
    %170 = vector.load %arg12[%c0_69, %c0_70, %c0_71] : memref<2x64x32xf32, #tpu.memory_space<vmem>>, vector<1x64x32xf32>
    %171 = vector.shape_cast %170 : vector<1x64x32xf32> to vector<64x32xf32>
    %cst_72 = arith.constant dense<0.000000e+00> : vector<16x32xf32>
    %172 = tpu.matmul %169, %171, %cst_72 {dimension_numbers = #tpu.dot_dimension_numbers<[1], [0], [0], [1], [0, 0, 1, 1], [], []>} : vector<16x64xf32>, vector<64x32xf32>, vector<16x32xf32> -> vector<16x32xf32>
    %c0_73 = arith.constant 0 : index
    %c0_74 = arith.constant 0 : index
    %c0_75 = arith.constant 0 : index
    %173 = vector.load %arg13[%c0_73, %c0_74, %c0_75] : memref<2x1x32xf32, #tpu.memory_space<vmem>>, vector<1x1x32xf32>
    %174 = vector.shape_cast %173 : vector<1x1x32xf32> to vector<1x32xf32>
    %175 = vector.broadcast %174 : vector<1x32xf32> to vector<16x32xf32>
    %176 = arith.addf %172, %175 : vector<16x32xf32>
    %177 = arith.addf %176, %149 : vector<16x32xf32>
    %c0_76 = arith.constant 0 : index
    %c0_77 = arith.constant 0 : index
    %c0_78 = arith.constant 0 : index
    %178 = vector.load %arg14[%c0_76, %c0_77, %c0_78] : memref<2x1x32xf32, #tpu.memory_space<vmem>>, vector<1x1x32xf32>
    %179 = vector.shape_cast %178 : vector<1x1x32xf32> to vector<1x32xf32>
    %c0_79 = arith.constant 0 : index
    %c0_80 = arith.constant 0 : index
    %c0_81 = arith.constant 0 : index
    %180 = vector.load %arg15[%c0_79, %c0_80, %c0_81] : memref<2x1x32xf32, #tpu.memory_space<vmem>>, vector<1x1x32xf32>
    %181 = vector.shape_cast %180 : vector<1x1x32xf32> to vector<1x32xf32>
    %cst_82 = arith.constant dense<0.000000e+00> : vector<16xf32>
    %182 = vector.multi_reduction <add>, %177, %cst_82 [1] : vector<16x32xf32> to vector<16xf32>
    %183 = vector.shape_cast %182 : vector<16xf32> to vector<16x1xf32>
    %cst_83 = arith.constant 3.200000e+01 : f32
    %184 = vector.broadcast %cst_83 : f32 to vector<16x1xf32>
    %185 = arith.divf %183, %184 : vector<16x1xf32>
    %186 = vector.broadcast %185 : vector<16x1xf32> to vector<16x32xf32>
    %187 = arith.subf %177, %186 : vector<16x32xf32>
    %188 = arith.mulf %187, %187 : vector<16x32xf32>
    %cst_84 = arith.constant dense<0.000000e+00> : vector<16xf32>
    %189 = vector.multi_reduction <add>, %188, %cst_84 [1] : vector<16x32xf32> to vector<16xf32>
    %190 = vector.shape_cast %189 : vector<16xf32> to vector<16x1xf32>
    %cst_85 = arith.constant 3.200000e+01 : f32
    %191 = vector.broadcast %cst_85 : f32 to vector<16x1xf32>
    %192 = arith.divf %190, %191 : vector<16x1xf32>
    %cst_86 = arith.constant 9.99999996E-13 : f32
    %193 = vector.broadcast %cst_86 : f32 to vector<16x1xf32>
    %194 = arith.addf %192, %193 : vector<16x1xf32>
    %195 = math.rsqrt %194 : vector<16x1xf32>
    %196 = vector.broadcast %195 : vector<16x1xf32> to vector<16x32xf32>
    %197 = arith.mulf %187, %196 : vector<16x32xf32>
    %198 = vector.broadcast %179 : vector<1x32xf32> to vector<16x32xf32>
    %199 = arith.mulf %197, %198 : vector<16x32xf32>
    %200 = vector.broadcast %181 : vector<1x32xf32> to vector<16x32xf32>
    %201 = arith.addf %199, %200 : vector<16x32xf32>
    %c1 = arith.constant 1 : index
    %c0_87 = arith.constant 0 : index
    %c0_88 = arith.constant 0 : index
    %202 = vector.load %arg4[%c1, %c0_87, %c0_88] : memref<2x32x96xf32, #tpu.memory_space<vmem>>, vector<1x32x96xf32>
    %203 = vector.shape_cast %202 : vector<1x32x96xf32> to vector<32x96xf32>
    %cst_89 = arith.constant dense<0.000000e+00> : vector<16x96xf32>
    %204 = tpu.matmul %201, %203, %cst_89 {dimension_numbers = #tpu.dot_dimension_numbers<[1], [0], [0], [1], [0, 0, 1, 1], [], []>} : vector<16x32xf32>, vector<32x96xf32>, vector<16x96xf32> -> vector<16x96xf32>
    %c1_90 = arith.constant 1 : index
    %c0_91 = arith.constant 0 : index
    %c0_92 = arith.constant 0 : index
    %205 = vector.load %arg5[%c1_90, %c0_91, %c0_92] : memref<2x1x96xf32, #tpu.memory_space<vmem>>, vector<1x1x96xf32>
    %206 = vector.shape_cast %205 : vector<1x1x96xf32> to vector<1x96xf32>
    %207 = vector.broadcast %206 : vector<1x96xf32> to vector<16x96xf32>
    %208 = arith.addf %204, %207 : vector<16x96xf32>
    %209 = vector.extract_strided_slice %208 {offsets = [0, 0], sizes = [8, 96], strides = [1, 1]} : vector<16x96xf32> to vector<8x96xf32>
    %210 = vector.extract_strided_slice %27 {offsets = [0, 0], sizes = [1, 8], strides = [1, 1]} : vector<2x8xf32> to vector<1x8xf32>
    %211 = vector.extract_strided_slice %209 {offsets = [0, 0], sizes = [8, 16], strides = [1, 1]} : vector<8x96xf32> to vector<8x16xf32>
    %212 = vector.extract_strided_slice %209 {offsets = [0, 32], sizes = [8, 16], strides = [1, 1]} : vector<8x96xf32> to vector<8x16xf32>
    %213 = vector.extract_strided_slice %209 {offsets = [0, 64], sizes = [8, 16], strides = [1, 1]} : vector<8x96xf32> to vector<8x16xf32>
    %cst_93 = arith.constant dense<0.000000e+00> : vector<8x8xf32>
    %214 = tpu.matmul %211, %212, %cst_93 {dimension_numbers = #tpu.dot_dimension_numbers<[1], [1], [0], [0], [0, 0, 1, 0], [], []>} : vector<8x16xf32>, vector<8x16xf32>, vector<8x8xf32> -> vector<8x8xf32>
    %cst_94 = arith.constant 2.500000e-01 : f32
    %215 = vector.broadcast %cst_94 : f32 to vector<8x8xf32>
    %216 = arith.mulf %214, %215 : vector<8x8xf32>
    %217 = vector.broadcast %210 : vector<1x8xf32> to vector<8x8xf32>
    %218 = arith.addf %216, %217 : vector<8x8xf32>
    %cst_95 = arith.constant dense<0xFF800000> : vector<8xf32>
    %219 = vector.multi_reduction <maximumf>, %218, %cst_95 [1] : vector<8x8xf32> to vector<8xf32>
    %220 = vector.shape_cast %219 : vector<8xf32> to vector<8x1xf32>
    %221 = vector.broadcast %220 : vector<8x1xf32> to vector<8x8xf32>
    %222 = arith.subf %218, %221 : vector<8x8xf32>
    %223 = math.exp %222 : vector<8x8xf32>
    %cst_96 = arith.constant dense<0.000000e+00> : vector<8xf32>
    %224 = vector.multi_reduction <add>, %223, %cst_96 [1] : vector<8x8xf32> to vector<8xf32>
    %225 = vector.shape_cast %224 : vector<8xf32> to vector<8x1xf32>
    %226 = tpu.reciprocal %225 {approx = true} : vector<8x1xf32> -> vector<8x1xf32>
    %227 = vector.broadcast %226 : vector<8x1xf32> to vector<8x8xf32>
    %228 = arith.mulf %223, %227 : vector<8x8xf32>
    %cst_97 = arith.constant dense<0.000000e+00> : vector<8x16xf32>
    %229 = tpu.matmul %228, %213, %cst_97 {dimension_numbers = #tpu.dot_dimension_numbers<[1], [0], [0], [1], [0, 0, 1, 1], [], []>} : vector<8x8xf32>, vector<8x16xf32>, vector<8x16xf32> -> vector<8x16xf32>
    %230 = vector.extract_strided_slice %209 {offsets = [0, 16], sizes = [8, 16], strides = [1, 1]} : vector<8x96xf32> to vector<8x16xf32>
    %231 = vector.extract_strided_slice %209 {offsets = [0, 48], sizes = [8, 16], strides = [1, 1]} : vector<8x96xf32> to vector<8x16xf32>
    %232 = vector.extract_strided_slice %209 {offsets = [0, 80], sizes = [8, 16], strides = [1, 1]} : vector<8x96xf32> to vector<8x16xf32>
    %cst_98 = arith.constant dense<0.000000e+00> : vector<8x8xf32>
    %233 = tpu.matmul %230, %231, %cst_98 {dimension_numbers = #tpu.dot_dimension_numbers<[1], [1], [0], [0], [0, 0, 1, 0], [], []>} : vector<8x16xf32>, vector<8x16xf32>, vector<8x8xf32> -> vector<8x8xf32>
    %cst_99 = arith.constant 2.500000e-01 : f32
    %234 = vector.broadcast %cst_99 : f32 to vector<8x8xf32>
    %235 = arith.mulf %233, %234 : vector<8x8xf32>
    %236 = vector.broadcast %210 : vector<1x8xf32> to vector<8x8xf32>
    %237 = arith.addf %235, %236 : vector<8x8xf32>
    %cst_100 = arith.constant dense<0xFF800000> : vector<8xf32>
    %238 = vector.multi_reduction <maximumf>, %237, %cst_100 [1] : vector<8x8xf32> to vector<8xf32>
    %239 = vector.shape_cast %238 : vector<8xf32> to vector<8x1xf32>
    %240 = vector.broadcast %239 : vector<8x1xf32> to vector<8x8xf32>
    %241 = arith.subf %237, %240 : vector<8x8xf32>
    %242 = math.exp %241 : vector<8x8xf32>
    %cst_101 = arith.constant dense<0.000000e+00> : vector<8xf32>
    %243 = vector.multi_reduction <add>, %242, %cst_101 [1] : vector<8x8xf32> to vector<8xf32>
    %244 = vector.shape_cast %243 : vector<8xf32> to vector<8x1xf32>
    %245 = tpu.reciprocal %244 {approx = true} : vector<8x1xf32> -> vector<8x1xf32>
    %246 = vector.broadcast %245 : vector<8x1xf32> to vector<8x8xf32>
    %247 = arith.mulf %242, %246 : vector<8x8xf32>
    %cst_102 = arith.constant dense<0.000000e+00> : vector<8x16xf32>
    %248 = tpu.matmul %247, %232, %cst_102 {dimension_numbers = #tpu.dot_dimension_numbers<[1], [0], [0], [1], [0, 0, 1, 1], [], []>} : vector<8x8xf32>, vector<8x16xf32>, vector<8x16xf32> -> vector<8x16xf32>
    %249 = tpu.concatenate %229, %248 in 1 : vector<8x16xf32>, vector<8x16xf32> -> vector<8x32xf32>
    %250 = vector.extract_strided_slice %208 {offsets = [8, 0], sizes = [8, 96], strides = [1, 1]} : vector<16x96xf32> to vector<8x96xf32>
    %251 = vector.extract_strided_slice %27 {offsets = [1, 0], sizes = [1, 8], strides = [1, 1]} : vector<2x8xf32> to vector<1x8xf32>
    %252 = vector.extract_strided_slice %250 {offsets = [0, 0], sizes = [8, 16], strides = [1, 1]} : vector<8x96xf32> to vector<8x16xf32>
    %253 = vector.extract_strided_slice %250 {offsets = [0, 32], sizes = [8, 16], strides = [1, 1]} : vector<8x96xf32> to vector<8x16xf32>
    %254 = vector.extract_strided_slice %250 {offsets = [0, 64], sizes = [8, 16], strides = [1, 1]} : vector<8x96xf32> to vector<8x16xf32>
    %cst_103 = arith.constant dense<0.000000e+00> : vector<8x8xf32>
    %255 = tpu.matmul %252, %253, %cst_103 {dimension_numbers = #tpu.dot_dimension_numbers<[1], [1], [0], [0], [0, 0, 1, 0], [], []>} : vector<8x16xf32>, vector<8x16xf32>, vector<8x8xf32> -> vector<8x8xf32>
    %cst_104 = arith.constant 2.500000e-01 : f32
    %256 = vector.broadcast %cst_104 : f32 to vector<8x8xf32>
    %257 = arith.mulf %255, %256 : vector<8x8xf32>
    %258 = vector.broadcast %251 : vector<1x8xf32> to vector<8x8xf32>
    %259 = arith.addf %257, %258 : vector<8x8xf32>
    %cst_105 = arith.constant dense<0xFF800000> : vector<8xf32>
    %260 = vector.multi_reduction <maximumf>, %259, %cst_105 [1] : vector<8x8xf32> to vector<8xf32>
    %261 = vector.shape_cast %260 : vector<8xf32> to vector<8x1xf32>
    %262 = vector.broadcast %261 : vector<8x1xf32> to vector<8x8xf32>
    %263 = arith.subf %259, %262 : vector<8x8xf32>
    %264 = math.exp %263 : vector<8x8xf32>
    %cst_106 = arith.constant dense<0.000000e+00> : vector<8xf32>
    %265 = vector.multi_reduction <add>, %264, %cst_106 [1] : vector<8x8xf32> to vector<8xf32>
    %266 = vector.shape_cast %265 : vector<8xf32> to vector<8x1xf32>
    %267 = tpu.reciprocal %266 {approx = true} : vector<8x1xf32> -> vector<8x1xf32>
    %268 = vector.broadcast %267 : vector<8x1xf32> to vector<8x8xf32>
    %269 = arith.mulf %264, %268 : vector<8x8xf32>
    %cst_107 = arith.constant dense<0.000000e+00> : vector<8x16xf32>
    %270 = tpu.matmul %269, %254, %cst_107 {dimension_numbers = #tpu.dot_dimension_numbers<[1], [0], [0], [1], [0, 0, 1, 1], [], []>} : vector<8x8xf32>, vector<8x16xf32>, vector<8x16xf32> -> vector<8x16xf32>
    %271 = vector.extract_strided_slice %250 {offsets = [0, 16], sizes = [8, 16], strides = [1, 1]} : vector<8x96xf32> to vector<8x16xf32>
    %272 = vector.extract_strided_slice %250 {offsets = [0, 48], sizes = [8, 16], strides = [1, 1]} : vector<8x96xf32> to vector<8x16xf32>
    %273 = vector.extract_strided_slice %250 {offsets = [0, 80], sizes = [8, 16], strides = [1, 1]} : vector<8x96xf32> to vector<8x16xf32>
    %cst_108 = arith.constant dense<0.000000e+00> : vector<8x8xf32>
    %274 = tpu.matmul %271, %272, %cst_108 {dimension_numbers = #tpu.dot_dimension_numbers<[1], [1], [0], [0], [0, 0, 1, 0], [], []>} : vector<8x16xf32>, vector<8x16xf32>, vector<8x8xf32> -> vector<8x8xf32>
    %cst_109 = arith.constant 2.500000e-01 : f32
    %275 = vector.broadcast %cst_109 : f32 to vector<8x8xf32>
    %276 = arith.mulf %274, %275 : vector<8x8xf32>
    %277 = vector.broadcast %251 : vector<1x8xf32> to vector<8x8xf32>
    %278 = arith.addf %276, %277 : vector<8x8xf32>
    %cst_110 = arith.constant dense<0xFF800000> : vector<8xf32>
    %279 = vector.multi_reduction <maximumf>, %278, %cst_110 [1] : vector<8x8xf32> to vector<8xf32>
    %280 = vector.shape_cast %279 : vector<8xf32> to vector<8x1xf32>
    %281 = vector.broadcast %280 : vector<8x1xf32> to vector<8x8xf32>
    %282 = arith.subf %278, %281 : vector<8x8xf32>
    %283 = math.exp %282 : vector<8x8xf32>
    %cst_111 = arith.constant dense<0.000000e+00> : vector<8xf32>
    %284 = vector.multi_reduction <add>, %283, %cst_111 [1] : vector<8x8xf32> to vector<8xf32>
    %285 = vector.shape_cast %284 : vector<8xf32> to vector<8x1xf32>
    %286 = tpu.reciprocal %285 {approx = true} : vector<8x1xf32> -> vector<8x1xf32>
    %287 = vector.broadcast %286 : vector<8x1xf32> to vector<8x8xf32>
    %288 = arith.mulf %283, %287 : vector<8x8xf32>
    %cst_112 = arith.constant dense<0.000000e+00> : vector<8x16xf32>
    %289 = tpu.matmul %288, %273, %cst_112 {dimension_numbers = #tpu.dot_dimension_numbers<[1], [0], [0], [1], [0, 0, 1, 1], [], []>} : vector<8x8xf32>, vector<8x16xf32>, vector<8x16xf32> -> vector<8x16xf32>
    %290 = tpu.concatenate %270, %289 in 1 : vector<8x16xf32>, vector<8x16xf32> -> vector<8x32xf32>
    %291 = tpu.concatenate %249, %290 in 0 : vector<8x32xf32>, vector<8x32xf32> -> vector<16x32xf32>
    %c1_113 = arith.constant 1 : index
    %c0_114 = arith.constant 0 : index
    %c0_115 = arith.constant 0 : index
    %292 = vector.load %arg6[%c1_113, %c0_114, %c0_115] : memref<2x32x32xf32, #tpu.memory_space<vmem>>, vector<1x32x32xf32>
    %293 = vector.shape_cast %292 : vector<1x32x32xf32> to vector<32x32xf32>
    %cst_116 = arith.constant dense<0.000000e+00> : vector<16x32xf32>
    %294 = tpu.matmul %291, %293, %cst_116 {dimension_numbers = #tpu.dot_dimension_numbers<[1], [0], [0], [1], [0, 0, 1, 1], [], []>} : vector<16x32xf32>, vector<32x32xf32>, vector<16x32xf32> -> vector<16x32xf32>
    %c1_117 = arith.constant 1 : index
    %c0_118 = arith.constant 0 : index
    %c0_119 = arith.constant 0 : index
    %295 = vector.load %arg7[%c1_117, %c0_118, %c0_119] : memref<2x1x32xf32, #tpu.memory_space<vmem>>, vector<1x1x32xf32>
    %296 = vector.shape_cast %295 : vector<1x1x32xf32> to vector<1x32xf32>
    %297 = vector.broadcast %296 : vector<1x32xf32> to vector<16x32xf32>
    %298 = arith.addf %294, %297 : vector<16x32xf32>
    %299 = arith.addf %298, %201 : vector<16x32xf32>
    %c1_120 = arith.constant 1 : index
    %c0_121 = arith.constant 0 : index
    %c0_122 = arith.constant 0 : index
    %300 = vector.load %arg8[%c1_120, %c0_121, %c0_122] : memref<2x1x32xf32, #tpu.memory_space<vmem>>, vector<1x1x32xf32>
    %301 = vector.shape_cast %300 : vector<1x1x32xf32> to vector<1x32xf32>
    %c1_123 = arith.constant 1 : index
    %c0_124 = arith.constant 0 : index
    %c0_125 = arith.constant 0 : index
    %302 = vector.load %arg9[%c1_123, %c0_124, %c0_125] : memref<2x1x32xf32, #tpu.memory_space<vmem>>, vector<1x1x32xf32>
    %303 = vector.shape_cast %302 : vector<1x1x32xf32> to vector<1x32xf32>
    %cst_126 = arith.constant dense<0.000000e+00> : vector<16xf32>
    %304 = vector.multi_reduction <add>, %299, %cst_126 [1] : vector<16x32xf32> to vector<16xf32>
    %305 = vector.shape_cast %304 : vector<16xf32> to vector<16x1xf32>
    %cst_127 = arith.constant 3.200000e+01 : f32
    %306 = vector.broadcast %cst_127 : f32 to vector<16x1xf32>
    %307 = arith.divf %305, %306 : vector<16x1xf32>
    %308 = vector.broadcast %307 : vector<16x1xf32> to vector<16x32xf32>
    %309 = arith.subf %299, %308 : vector<16x32xf32>
    %310 = arith.mulf %309, %309 : vector<16x32xf32>
    %cst_128 = arith.constant dense<0.000000e+00> : vector<16xf32>
    %311 = vector.multi_reduction <add>, %310, %cst_128 [1] : vector<16x32xf32> to vector<16xf32>
    %312 = vector.shape_cast %311 : vector<16xf32> to vector<16x1xf32>
    %cst_129 = arith.constant 3.200000e+01 : f32
    %313 = vector.broadcast %cst_129 : f32 to vector<16x1xf32>
    %314 = arith.divf %312, %313 : vector<16x1xf32>
    %cst_130 = arith.constant 9.99999996E-13 : f32
    %315 = vector.broadcast %cst_130 : f32 to vector<16x1xf32>
    %316 = arith.addf %314, %315 : vector<16x1xf32>
    %317 = math.rsqrt %316 : vector<16x1xf32>
    %318 = vector.broadcast %317 : vector<16x1xf32> to vector<16x32xf32>
    %319 = arith.mulf %309, %318 : vector<16x32xf32>
    %320 = vector.broadcast %301 : vector<1x32xf32> to vector<16x32xf32>
    %321 = arith.mulf %319, %320 : vector<16x32xf32>
    %322 = vector.broadcast %303 : vector<1x32xf32> to vector<16x32xf32>
    %323 = arith.addf %321, %322 : vector<16x32xf32>
    %c1_131 = arith.constant 1 : index
    %c0_132 = arith.constant 0 : index
    %c0_133 = arith.constant 0 : index
    %324 = vector.load %arg10[%c1_131, %c0_132, %c0_133] : memref<2x32x64xf32, #tpu.memory_space<vmem>>, vector<1x32x64xf32>
    %325 = vector.shape_cast %324 : vector<1x32x64xf32> to vector<32x64xf32>
    %cst_134 = arith.constant dense<0.000000e+00> : vector<16x64xf32>
    %326 = tpu.matmul %323, %325, %cst_134 {dimension_numbers = #tpu.dot_dimension_numbers<[1], [0], [0], [1], [0, 0, 1, 1], [], []>} : vector<16x32xf32>, vector<32x64xf32>, vector<16x64xf32> -> vector<16x64xf32>
    %c1_135 = arith.constant 1 : index
    %c0_136 = arith.constant 0 : index
    %c0_137 = arith.constant 0 : index
    %327 = vector.load %arg11[%c1_135, %c0_136, %c0_137] : memref<2x1x64xf32, #tpu.memory_space<vmem>>, vector<1x1x64xf32>
    %328 = vector.shape_cast %327 : vector<1x1x64xf32> to vector<1x64xf32>
    %329 = vector.broadcast %328 : vector<1x64xf32> to vector<16x64xf32>
    %330 = arith.addf %326, %329 : vector<16x64xf32>
    %cst_138 = arith.constant 5.000000e-01 : f32
    %331 = vector.broadcast %cst_138 : f32 to vector<16x64xf32>
    %332 = arith.mulf %331, %330 : vector<16x64xf32>
    %cst_139 = arith.constant 4.471500e-02 : f32
    %333 = vector.broadcast %cst_139 : f32 to vector<16x64xf32>
    %334 = arith.mulf %333, %330 : vector<16x64xf32>
    %335 = arith.mulf %334, %330 : vector<16x64xf32>
    %336 = arith.mulf %335, %330 : vector<16x64xf32>
    %337 = arith.addf %330, %336 : vector<16x64xf32>
    %cst_140 = arith.constant 0.797884583 : f32
    %338 = vector.broadcast %cst_140 : f32 to vector<16x64xf32>
    %339 = arith.mulf %338, %337 : vector<16x64xf32>
    %340 = math.tanh %339 : vector<16x64xf32>
    %cst_141 = arith.constant 1.000000e+00 : f32
    %341 = vector.broadcast %cst_141 : f32 to vector<16x64xf32>
    %342 = arith.addf %341, %340 : vector<16x64xf32>
    %343 = arith.mulf %332, %342 : vector<16x64xf32>
    %c1_142 = arith.constant 1 : index
    %c0_143 = arith.constant 0 : index
    %c0_144 = arith.constant 0 : index
    %344 = vector.load %arg12[%c1_142, %c0_143, %c0_144] : memref<2x64x32xf32, #tpu.memory_space<vmem>>, vector<1x64x32xf32>
    %345 = vector.shape_cast %344 : vector<1x64x32xf32> to vector<64x32xf32>
    %cst_145 = arith.constant dense<0.000000e+00> : vector<16x32xf32>
    %346 = tpu.matmul %343, %345, %cst_145 {dimension_numbers = #tpu.dot_dimension_numbers<[1], [0], [0], [1], [0, 0, 1, 1], [], []>} : vector<16x64xf32>, vector<64x32xf32>, vector<16x32xf32> -> vector<16x32xf32>
    %c1_146 = arith.constant 1 : index
    %c0_147 = arith.constant 0 : index
    %c0_148 = arith.constant 0 : index
    %347 = vector.load %arg13[%c1_146, %c0_147, %c0_148] : memref<2x1x32xf32, #tpu.memory_space<vmem>>, vector<1x1x32xf32>
    %348 = vector.shape_cast %347 : vector<1x1x32xf32> to vector<1x32xf32>
    %349 = vector.broadcast %348 : vector<1x32xf32> to vector<16x32xf32>
    %350 = arith.addf %346, %349 : vector<16x32xf32>
    %351 = arith.addf %350, %323 : vector<16x32xf32>
    %c1_149 = arith.constant 1 : index
    %c0_150 = arith.constant 0 : index
    %c0_151 = arith.constant 0 : index
    %352 = vector.load %arg14[%c1_149, %c0_150, %c0_151] : memref<2x1x32xf32, #tpu.memory_space<vmem>>, vector<1x1x32xf32>
    %353 = vector.shape_cast %352 : vector<1x1x32xf32> to vector<1x32xf32>
    %c1_152 = arith.constant 1 : index
    %c0_153 = arith.constant 0 : index
    %c0_154 = arith.constant 0 : index
    %354 = vector.load %arg15[%c1_152, %c0_153, %c0_154] : memref<2x1x32xf32, #tpu.memory_space<vmem>>, vector<1x1x32xf32>
    %355 = vector.shape_cast %354 : vector<1x1x32xf32> to vector<1x32xf32>
    %cst_155 = arith.constant dense<0.000000e+00> : vector<16xf32>
    %356 = vector.multi_reduction <add>, %351, %cst_155 [1] : vector<16x32xf32> to vector<16xf32>
    %357 = vector.shape_cast %356 : vector<16xf32> to vector<16x1xf32>
    %cst_156 = arith.constant 3.200000e+01 : f32
    %358 = vector.broadcast %cst_156 : f32 to vector<16x1xf32>
    %359 = arith.divf %357, %358 : vector<16x1xf32>
    %360 = vector.broadcast %359 : vector<16x1xf32> to vector<16x32xf32>
    %361 = arith.subf %351, %360 : vector<16x32xf32>
    %362 = arith.mulf %361, %361 : vector<16x32xf32>
    %cst_157 = arith.constant dense<0.000000e+00> : vector<16xf32>
    %363 = vector.multi_reduction <add>, %362, %cst_157 [1] : vector<16x32xf32> to vector<16xf32>
    %364 = vector.shape_cast %363 : vector<16xf32> to vector<16x1xf32>
    %cst_158 = arith.constant 3.200000e+01 : f32
    %365 = vector.broadcast %cst_158 : f32 to vector<16x1xf32>
    %366 = arith.divf %364, %365 : vector<16x1xf32>
    %cst_159 = arith.constant 9.99999996E-13 : f32
    %367 = vector.broadcast %cst_159 : f32 to vector<16x1xf32>
    %368 = arith.addf %366, %367 : vector<16x1xf32>
    %369 = math.rsqrt %368 : vector<16x1xf32>
    %370 = vector.broadcast %369 : vector<16x1xf32> to vector<16x32xf32>
    %371 = arith.mulf %361, %370 : vector<16x32xf32>
    %372 = vector.broadcast %353 : vector<1x32xf32> to vector<16x32xf32>
    %373 = arith.mulf %371, %372 : vector<16x32xf32>
    %374 = vector.broadcast %355 : vector<1x32xf32> to vector<16x32xf32>
    %375 = arith.addf %373, %374 : vector<16x32xf32>
    %376 = vector.extract_strided_slice %375 {offsets = [0, 0], sizes = [1, 32], strides = [1, 1]} : vector<16x32xf32> to vector<1x32xf32>
    %377 = vector.extract_strided_slice %375 {offsets = [8, 0], sizes = [1, 32], strides = [1, 1]} : vector<16x32xf32> to vector<1x32xf32>
    %378 = tpu.concatenate %376, %377 in 0 : vector<1x32xf32>, vector<1x32xf32> -> vector<2x32xf32>
    %c0_160 = arith.constant 0 : index
    %c0_161 = arith.constant 0 : index
    %379 = vector.load %arg16[%c0_160, %c0_161] : memref<32x128xf32, #tpu.memory_space<vmem>>, vector<32x128xf32>
    %cst_162 = arith.constant dense<0.000000e+00> : vector<2x128xf32>
    %380 = tpu.matmul %378, %379, %cst_162 {dimension_numbers = #tpu.dot_dimension_numbers<[1], [0], [0], [1], [0, 0, 1, 1], [], []>} : vector<2x32xf32>, vector<32x128xf32>, vector<2x128xf32> -> vector<2x128xf32>
    %c0_163 = arith.constant 0 : index
    %c0_164 = arith.constant 0 : index
    %381 = vector.load %arg17[%c0_163, %c0_164] : memref<1x128xf32, #tpu.memory_space<vmem>>, vector<1x128xf32>
    %382 = vector.broadcast %381 : vector<1x128xf32> to vector<2x128xf32>
    %383 = arith.addf %380, %382 : vector<2x128xf32>
    %384 = math.tanh %383 : vector<2x128xf32>
    %c0_165 = arith.constant 0 : index
    %c0_166 = arith.constant 0 : index
    %385 = vector.load %arg18[%c0_165, %c0_166] : memref<128x128xf32, #tpu.memory_space<vmem>>, vector<128x128xf32>
    %cst_167 = arith.constant dense<0.000000e+00> : vector<2x128xf32>
    %386 = tpu.matmul %384, %385, %cst_167 {dimension_numbers = #tpu.dot_dimension_numbers<[1], [0], [0], [1], [0, 0, 1, 1], [], []>} : vector<2x128xf32>, vector<128x128xf32>, vector<2x128xf32> -> vector<2x128xf32>
    %c0_168 = arith.constant 0 : index
    %c0_169 = arith.constant 0 : index
    %387 = vector.load %arg19[%c0_168, %c0_169] : memref<1x128xf32, #tpu.memory_space<vmem>>, vector<1x128xf32>
    %388 = vector.broadcast %387 : vector<1x128xf32> to vector<2x128xf32>
    %389 = arith.addf %386, %388 : vector<2x128xf32>
    %c0_170 = arith.constant 0 : index
    %c0_171 = arith.constant 0 : index
    %390 = vector.load %arg20[%c0_170, %c0_171] : memref<2x128xf32, #tpu.memory_space<vmem>>, vector<2x128xf32>
    tpu.vector_store %arg20[%c0_170, %c0_171], %384 {strides = array<i32>} : memref<2x128xf32, #tpu.memory_space<vmem>>, vector<2x128xf32>,
    %c0_172 = arith.constant 0 : index
    %c0_173 = arith.constant 0 : index
    %391 = vector.load %arg21[%c0_172, %c0_173] : memref<2x128xf32, #tpu.memory_space<vmem>>, vector<2x128xf32>
    tpu.vector_store %arg21[%c0_172, %c0_173], %389 {strides = array<i32>} : memref<2x128xf32, #tpu.memory_space<vmem>>, vector<2x128xf32>,
    return
  }
}

</mosaic_0001>

<bundles_post_ra>
// kernel: bert_classifier_forward.1
= control target key start
LH: loop header
LB: loop body
LE: loop exit
PB: predicated region body
PF: predicated region fallthrough
CT: control target
= control target key end

     0   :  { %s3837_s0 = inlined_call_operand.vmem [shape: f32[16,32], index: 0, kind: input, shape index: {}]   ;;  %s3838_s1 = inlined_call_operand.vmem [shape: f32[2,8], index: 1, kind: input, shape index: {}]   ;;  %s3839_s2 = inlined_call_operand.vmem [shape: f32[1,32], index: 2, kind: input, shape index: {}]   ;;  %s3840_s3 = inlined_call_operand.vmem [shape: f32[1,32], index: 3, kind: input, shape index: {}]   ;;  %s3841_s4 = inlined_call_operand.vmem [shape: f32[2,32,96], index: 4, kind: input, shape index: {}]   ;;  %s3842_s5 = inlined_call_operand.vmem [shape: f32[2,1,96], index: 5, kind: input, shape index: {}]   ;;  %s3843_s6 = inlined_call_operand.vmem [shape: f32[2,32,32], index: 6, kind: input, shape index: {}]   ;;  %s3844_s7 = inlined_call_operand.vmem [shape: f32[2,1,32], index: 7, kind: input, shape index: {}]   ;;  %s3845_s8 = inlined_call_operand.vmem [shape: f32[2,1,32], index: 8, kind: input, shape index: {}]   ;;  %s3846_s9 = inlined_call_operand.vmem [shape: f32[2,1,32], index: 9, kind: input, shape index: {}]   ;;  %s3847_s10 = inlined_call_operand.vmem [shape: f32[2,32,64], index: 10, kind: input, shape index: {}]   ;;  %s3848_s11 = inlined_call_operand.vmem [shape: f32[2,1,64], index: 11, kind: input, shape index: {}]   ;;  %s3849_s12 = inlined_call_operand.vmem [shape: f32[2,64,32], index: 12, kind: input, shape index: {}]   ;;  %s3850_s13 = inlined_call_operand.vmem [shape: f32[2,1,32], index: 13, kind: input, shape index: {}]   ;;  %s3851_s14 = inlined_call_operand.vmem [shape: f32[2,1,32], index: 14, kind: input, shape index: {}]   ;;  %s3852_s15 = inlined_call_operand.vmem [shape: f32[2,1,32], index: 15, kind: input, shape index: {}]   ;;  %s3853_s16 = inlined_call_operand.vmem [shape: f32[32,128], index: 16, kind: input, shape index: {}]   ;;  %s3854_s17 = inlined_call_operand.vmem [shape: f32[1,128], index: 17, kind: input, shape index: {}]   ;;  %s3855_s18 = inlined_call_operand.vmem [shape: f32[128,128], index: 18, kind: input, shape index: {}]   ;;  %s3856_s19 = inlined_call_operand.vmem [shape: f32[1,128], index: 19, kind: input, shape index: {}]   ;;  %s3857_s20 = inlined_call_operand.hbm [shape: f32[2,128], index: 20, kind: output, shape index: {0}]   ;;  %s3858_s21 = inlined_call_operand.hbm [shape: f32[2,128], index: 21, kind: output, shape index: {1}]  }
   0x1   :  { %3864 = sst [smem:[#allocation8_spill]] %s3837_s0 }
   0x2   :  { %3865 = sst [smem:[#allocation9_spill]] %s3838_s1 }
   0x3   :  { %3866 = sst [smem:[#allocation10_spill]] %s3839_s2 }
   0x4   :  { %3867 = sst [smem:[#allocation11_spill]] %s3840_s3 }
   0x5   :  { %3868 = sst [smem:[#allocation12_spill]] %s3841_s4 }
   0x6   :  { %3869 = sst [smem:[#allocation13_spill]] %s3842_s5 }
   0x7   :  { %27 = vsyncpa [#allocation3], 0  ;;  %s3870_s26 = sld [smem:[#allocation8_spill]]  ;;  %vm73_vm0 = vcmask 261120  }
   0xd   :  { %v69_v0 = vld [vmem:[%s3870_s26] sm:$0xff]  ;;  %v70_v1 = vld [vmem:[%s3870_s26 + $0x8] sm:$0xff] }
   0xe   :  { %28 = vsyncpa [#allocation5], 0  ;;  %v74_v2 = vsel %vm73_vm0, %v69_v0, 0.0  ;;  %v77_v3 = vsel %vm73_vm0, %v70_v1, 0.0  ;;  %s3871_s0 = sld [smem:[#allocation12_spill]]  ;;  %v3217_v34 = vmov 0.0   ;;  %v291_v46 = vlaneseq }
   0xf   :  { %75 = vadd.xlane.f32.xlu0 %v74_v2  ;;  %s3872_s25 = sld [smem:[#allocation10_spill]]  ;;  %2887 = vmatprep.subr.mxu1 %v3217_v34  ;;  %vm3218_vm1 = vmmov 0   ;;  %s3219_s30 = smov 80   ;;  %vm215_vm2 = vcmask 130048   ;;  %vm296_vm3 = vcmask 64512   ;;  %vm1161_vm4 = vcmask 523264  }
  0x10   :  { %s3873_s3 = sld [smem:[#allocation11_spill]]  ;;  %2889 = vmatprep.mubr.msk.f32.mxu1 %vm3218_vm1, %v3217_v34  ;;  %s3220_s5 = smov 96   ;;  %v292_v49 = vshrl.u32 %v291_v46, 7  ;;  %vm2462_vm5 = vcmask 1040384  }
  0x11   :  { %s3874_s4 = sld [smem:[#allocation13_spill]]  ;;  %s3221_s22 = smov 112  }
  0x12   :  { %s3875_s24 = sld [smem:[#allocation9_spill]]  ;;  %v293_v51 = vsub.s32 0, %v292_v49  ;;  %v636_v57 = vsub.s32 1, %v292_v49  ;;  %s3222_s2 = smov 48  }
  0x13   :  { %78 = vadd.xlane.f32.xlu0 %v77_v3  ;;  %s3862_s26 = smov 16  }
  0x14   :  { %v123_v14 = vld [vmem:[%s3871_s0 + $0x18] sm:$0xff]  ;;  %v122_v15 = vld [vmem:[%s3871_s0 + $0x10] sm:$0xff]  ;;  %v121_v16 = vld [vmem:[%s3871_s0 + $0x8] sm:$0xff] }
  0x15   :  { %2871 = vmatprep.subr.mxu0 %v123_v14  ;;  %v120_v17 = vld [vmem:[%s3871_s0] sm:$0xff] }
  0x16   :  { %2872 = vmatpush3.msra.mxu0 %v123_v14  ;;  %v2672_v25 = vld [vmem:[%s3872_s25] ss:$0 sm:$0xff]  ;;  %s3223_s25 = smov 64  }
  0x17   :  { %2873 = vmatprep.subr.mxu0 %v122_v15  ;;  %v2673_v27 = vld [vmem:[%s3873_s3] ss:$0 sm:$0xff]  ;;  %s3876_s3 = smov 16  }
  0x18   :  { %2874 = vmatpush3.msra.mxu0 %v122_v15  ;;  %v2674_v36 = vld [vmem:[%s3874_s4] ss:$0 sm:$0xff] }
  0x19   :  { %2875 = vmatprep.subr.mxu0 %v121_v16  ;;  %v117_v47 = vld [vmem:[%s3875_s24] sm:$0x3] }
  0x1a   :  { %2876 = vmatpush3.msra.mxu0 %v121_v16  ;;  %v118_v48 = vsub.f32 1.0, %v117_v47 }
  0x1b   :  { %2877 = vmatprep.subr.mxu0 %v120_v17 }
  0x1c   :  { %2878 = vmatpush3.msra.mxu0 %v120_v17  ;;  %v119_v50 = vmul.f32 -10000.0, %v118_v48 }
  0x1d   :  { %2882 = vmatprep.subr.mxu0 %v3217_v34 }
  0x1e   :  { %v3420_v52 = vrot.slane %v119_v50, %v293_v51  ;;  %v3425_v63 = vrot.slane %v119_v50, %v636_v57  ;;  %v901_v50 = vld [vmem:[%s3843_s6 + $0x18] sm:$0xff]  ;;  %v900_v51 = vld [vmem:[%s3843_s6 + $0x10] sm:$0xff] }
  0x98   :  { %v76_v4 = vpop.xlane.xlu0 %75 }
  0x99   :  { %v81_v5 = vmul.f32 0.03125, %v76_v4 }
  0x9b   :  { %v83_v6 = vsub.f32 %v69_v0, %v81_v5 }
  0x9c   :  { %v79_v7 = vpop.xlane.xlu0 %78 }
  0x9d   :  { %v82_v8 = vmul.f32 0.03125, %v79_v7  ;;  %v85_v9 = vmul.f32 %v83_v6, %v83_v6 }
  0x9f   :  { %v84_v10 = vsub.f32 %v70_v1, %v82_v8  ;;  %v87_v11 = vsel %vm73_vm0, %v85_v9, 0.0 }
  0xa0   :  { %88 = vadd.xlane.f32.xlu1 %v87_v11 }
  0xa1   :  { %v86_v12 = vmul.f32 %v84_v10, %v84_v10 }
  0xa3   :  { %v90_v13 = vsel %vm73_vm0, %v86_v12, 0.0 }
  0xa4   :  { %91 = vadd.xlane.f32.xlu1 %v90_v13 }
 0x129   :  { %v89_v18 = vpop.xlane.xlu1 %88 }
 0x12a   :  { %v93_v19 = vmul.f32 0.03125, %v89_v18 }
 0x12c   :  { %v95_v20 = vadd.f32 1e-12, %v93_v19 }
 0x12d   :  { %v92_v21 = vpop.xlane.xlu1 %91 }
 0x12e   :  { %3111 = vrsqrt.f32 %v95_v20  ;;  %v94_v22 = vmul.f32 0.03125, %v92_v21 }
 0x130   :  { %v96_v23 = vadd.f32 1e-12, %v94_v22 }
 0x132   :  { %3113 = vrsqrt.f32 %v96_v23 }
 0x13b   :  { %v3112_v24 = vpop.eup %3111 }
 0x13c   :  { %v99_v26 = vmul.f32 %v3112_v24, %v83_v6 }
 0x13e   :  { %v107_v28 = vmul.f32 %v2672_v25, %v99_v26 }
 0x13f   :  { %v3114_v29 = vpop.eup %3113 }
 0x140   :  { %v100_v30 = vmul.f32 %v3114_v29, %v84_v10  ;;  %v3365_v31 = vadd.f32 %v2673_v27, %v107_v28 }
 0x142   :  { %v108_v32 = vmul.f32 %v2672_v25, %v100_v30  ;;  %2879 = vmatprep.mubr.msk.f32.mxu0 %vm73_vm0, %v3365_v31 }
 0x144   :  { %v3369_v33 = vadd.f32 %v2673_v27, %v108_v32 }
 0x146   :  { %2880 = vmatmul.mubr.msk.f32.vlgmr.msra.gmra.mxu0 %vm73_vm0, %v3369_v33 }
 0x147   :  { %2884 = vmatprep.mubr.msk.f32.mxu0 %vm3218_vm1, %v3217_v34 }
 0x206   :  { %v2881_v35 = vpop.f32.mrf.mxu0 }
 0x207   :  { %v3388_v39 = vadd.f32 %v2881_v35, %v2674_v36 }
 0x208   :  { %v203_v37 = vpop.f32.mrf.mxu0 }
 0x209   :  { %v3382_v38 = vadd.f32 %v2674_v36, %v203_v37 }
 0x20b   :  { %386 = vrot.lane.b32.xlu1 %v3382_v38, %s3219_s30  ;;  %213 = vrot.lane.b32.xlu0 %v3382_v38, %s3220_s5 }
 0x20f   :  { %384 = vrot.lane.b32.xlu1 %v3382_v38, %s3221_s22  ;;  %728 = vrot.lane.b32.xlu0 %v3388_v39, %s3219_s30 }
 0x213   :  { %557 = vrot.lane.b32.xlu1 %v3388_v39, %s3220_s5 }
 0x217   :  { %726 = vrot.lane.b32.xlu1 %v3388_v39, %s3221_s22 }
 0x27d   :  { %v387_v40 = vpop.permute.xlu1 %386  ;;  %v214_v41 = vpop.permute.xlu0 %213 }
 0x27e   :  { %2883 = vmatpush3.xpose.msk.msra.mxu0 %vm215_vm2, %v214_v41 }
 0x27f   :  { %2892 = vmatprep.subr.mxu0 %v3217_v34 }
 0x281   :  { %v385_v42 = vpop.permute.xlu1 %384  ;;  %2885 = vmatmul.mubr.msk.f32.vlgmr.msra.gmra.mxu0 %vm215_vm2, %v3382_v38  ;;  %v729_v44 = vpop.permute.xlu0 %728 }
 0x282   :  { %2893 = vmatpush3.xpose.msk.msra.mxu0 %vm215_vm2, %v387_v40  ;;  %2894 = vmatprep.mubr.msk.f32.mxu0 %vm3218_vm1, %v3217_v34 }
 0x283   :  { %2902 = vmatprep.subr.mxu0 %v3217_v34 }
 0x285   :  { %v558_v43 = vpop.permute.xlu1 %557  ;;  %2895 = vmatmul.mubr.msk.f32.vlgmr.msra.gmra.mxu0 %vm215_vm2, %v385_v42 }
 0x286   :  { %2903 = vmatpush3.xpose.msk.msra.mxu0 %vm215_vm2, %v558_v43  ;;  %2904 = vmatprep.mubr.msk.f32.mxu0 %vm3218_vm1, %v3217_v34 }
 0x287   :  { %2912 = vmatprep.subr.mxu0 %v3217_v34 }
 0x289   :  { %2905 = vmatmul.mubr.msk.f32.vlgmr.msra.gmra.mxu0 %vm215_vm2, %v3388_v39  ;;  %v727_v45 = vpop.permute.xlu1 %726 }
 0x28a   :  { %2913 = vmatpush3.xpose.msk.msra.mxu0 %vm215_vm2, %v729_v44  ;;  %2914 = vmatprep.mubr.msk.f32.mxu0 %vm3218_vm1, %v3217_v34 }
 0x28b   :  { %2922 = vmatprep.subr.mxu0 %v901_v50 }
 0x28d   :  { %2915 = vmatmul.mubr.msk.f32.vlgmr.msra.gmra.mxu0 %vm215_vm2, %v727_v45 }
 0x28e   :  { %2923 = vmatpush3.msra.mxu0 %v901_v50  ;;  %v1147_v50 = vld [vmem:[%s3849_s12 + $0x8] sm:$0xff] }
 0x28f   :  { %2924 = vmatprep.subr.mxu0 %v900_v51 }
 0x290   :  { %2925 = vmatpush3.msra.mxu0 %v900_v51  ;;  %v1146_v51 = vld [vmem:[%s3849_s12] sm:$0xff] }
 0x341   :  { %v286_v53 = vpop.f32.mrf.mxu0 }
 0x342   :  { %v290_v54 = vmul.f32 0.25, %v286_v53  ;;  %v899_v53 = vld [vmem:[%s3843_s6 + $0x8] sm:$0xff] }
 0x343   :  { %v2886_v55 = vpop.f32.mrf.mxu0  ;;  %2926 = vmatprep.subr.mxu0 %v899_v53 }
 0x344   :  { %v295_v56 = vadd.f32 %v3420_v52, %v290_v54  ;;  %v898_v54 = vld [vmem:[%s3843_s6] sm:$0xff]  ;;  %2927 = vmatpush3.msra.mxu0 %v899_v53 }
 0x345   :  { %v458_v58 = vpop.f32.mrf.mxu0  ;;  %2928 = vmatprep.subr.mxu0 %v898_v54  ;;  %v2694_v53 = vld [vmem:[%s3848_s11] ss:$0 sm:$0xff] }
 0x346   :  { %v462_v59 = vmul.f32 0.25, %v458_v58  ;;  %v297_v60 = vsel %vm296_vm3, %v295_v56, -inf  ;;  %2929 = vmatpush3.msra.mxu0 %v898_v54 }
 0x347   :  { %298 = vmax.xlane.f32.xlu0 %v297_v60  ;;  %v2896_v61 = vpop.f32.mrf.mxu0 }
 0x348   :  { %v463_v62 = vadd.f32 %v462_v59, %v3420_v52 }
 0x349   :  { %v629_v0 = vpop.f32.mrf.mxu0 }
 0x34a   :  { %v633_v1 = vmul.f32 0.25, %v629_v0  ;;  %v464_v2 = vsel %vm296_vm3, %v463_v62, -inf }
 0x34b   :  { %465 = vmax.xlane.f32.xlu1 %v464_v2  ;;  %v2906_v3 = vpop.f32.mrf.mxu0 }
 0x34c   :  { %v638_v4 = vadd.f32 %v3425_v63, %v633_v1 }
 0x34d   :  { %v800_v5 = vpop.f32.mrf.mxu0 }
 0x34e   :  { %v804_v6 = vmul.f32 0.25, %v800_v5  ;;  %v639_v7 = vsel %vm296_vm3, %v638_v4, -inf }
 0x34f   :  { %640 = vmax.xlane.f32.xlu0 %v639_v7  ;;  %v2916_v8 = vpop.f32.mrf.mxu0 }
 0x350   :  { %v805_v9 = vadd.f32 %v804_v6, %v3425_v63 }
 0x352   :  { %v806_v10 = vsel %vm296_vm3, %v805_v9, -inf }
 0x353   :  { %807 = vmax.xlane.f32.xlu0 %v806_v10 }
 0x3d0   :  { %v299_v11 = vpop.xlane.xlu0 %298 }
 0x3d1   :  { %v300_v12 = vsub.f32 %v295_v56, %v299_v11 }
 0x3d3   :  { %v301_v13 = vmul.f32 1.442695, %v300_v12 }
 0x3d4   :  { %v466_v14 = vpop.xlane.xlu1 %465 }
 0x3d5   :  { %3115 = vpow2.f32 %v301_v13  ;;  %v467_v15 = vsub.f32 %v463_v62, %v466_v14 }
 0x3d7   :  { %v468_v16 = vmul.f32 1.442695, %v467_v15 }
 0x3d8   :  { %v641_v17 = vpop.xlane.xlu0 %640 }
 0x3d9   :  { %3117 = vpow2.f32 %v468_v16  ;;  %v642_v18 = vsub.f32 %v638_v4, %v641_v17  ;;  %v2689_v4 = vld [vmem:[%s3844_s7] ss:$0 sm:$0xff] }
 0x3db   :  { %v643_v19 = vmul.f32 1.442695, %v642_v18 }
 0x3dc   :  { %v808_v26 = vpop.xlane.xlu0 %807 }
 0x3dd   :  { %3119 = vpow2.f32 %v643_v19  ;;  %v809_v27 = vsub.f32 %v805_v9, %v808_v26 }
 0x3df   :  { %v810_v28 = vmul.f32 1.442695, %v809_v27 }
 0x3e1   :  { %3121 = vpow2.f32 %v810_v28 }
 0x3e2   :  { %v3116_v20 = vpop.eup %3115 }
 0x3e3   :  { %v303_v21 = vsel %vm296_vm3, %v3116_v20, 0.0 }
 0x3e4   :  { %304 = vadd.xlane.f32.xlu0 %v303_v21 }
 0x3e6   :  { %v3118_v22 = vpop.eup %3117 }
 0x3e7   :  { %v470_v23 = vsel %vm296_vm3, %v3118_v22, 0.0 }
 0x3e8   :  { %471 = vadd.xlane.f32.xlu1 %v470_v23  ;;  %v1037_v23 = vld [vmem:[%s3847_s10 + $0x8] sm:$0xff] }
 0x3ea   :  { %v3120_v24 = vpop.eup %3119 }
 0x3eb   :  { %v645_v25 = vsel %vm296_vm3, %v3120_v24, 0.0 }
 0x3ec   :  { %646 = vadd.xlane.f32.xlu0 %v645_v25 }
 0x3ee   :  { %v3122_v29 = vpop.eup %3121 }
 0x3ef   :  { %v812_v30 = vsel %vm296_vm3, %v3122_v29, 0.0 }
 0x3f9   :  { %475 = vrot.lane.b32.xlu1 %v3382_v38, %s3222_s2 }
 0x3fd   :  { %650 = vrot.lane.b32.xlu1 %v3388_v39, %s3223_s25 }
 0x402   :  { %308 = vrot.lane.b32.xlu0 %v3382_v38, %s3223_s25 }
 0x421   :  { %813 = vadd.xlane.f32.xlu1 %v812_v30 }
 0x432   :  { %817 = vrot.lane.b32.xlu1 %v3388_v39, %s3222_s2 }
 0x46d   :  { %v305_v32 = vpop.xlane.xlu0 %304 }
 0x46e   :  { %3123 = vrcp.f32 %v305_v32 }
 0x471   :  { %v472_v35 = vpop.xlane.xlu1 %471 }
 0x472   :  { %3125 = vrcp.f32 %v472_v35  ;;  %v2692_v35 = vld [vmem:[%s3845_s8] ss:$0 sm:$0xff] }
 0x475   :  { %v647_v36 = vpop.xlane.xlu0 %646  ;;  %v476_v40 = vpop.permute.xlu1 %475 }
 0x476   :  { %3127 = vrcp.f32 %v647_v36 }
 0x479   :  { %v309_v37 = vpop.permute.xlu0 %308  ;;  %v651_v43 = vpop.permute.xlu1 %650 }
 0x47a   :  { %2888 = vmatpush3.msra.mxu1 %v309_v37  ;;  %v2693_v37 = vld [vmem:[%s3846_s9] ss:$0 sm:$0xff] }
 0x47b   :  { %v3124_v38 = vpop.eup %3123  ;;  %2897 = vmatprep.subr.mxu1 %v3217_v34 }
 0x47c   :  { %v307_v41 = vmul.f32 %v3124_v38, %v3116_v20 }
 0x47e   :  { %2890 = vmatmul.mubr.msk.f32.vlgmr.msra.gmra.mxu1 %vm296_vm3, %v307_v41 }
 0x47f   :  { %v3126_v42 = vpop.eup %3125  ;;  %2898 = vmatpush3.msra.mxu1 %v476_v40  ;;  %2899 = vmatprep.mubr.msk.f32.mxu1 %vm3218_vm1, %v3217_v34 }
 0x480   :  { %2907 = vmatprep.subr.mxu1 %v3217_v34  ;;  %v474_v39 = vmul.f32 %v3126_v42, %v3118_v22  ;;  %v1038_v22 = vld [vmem:[%s3847_s10 + $0x10] sm:$0xff] }
 0x482   :  { %2900 = vmatmul.mubr.msk.f32.vlgmr.msra.gmra.mxu1 %vm296_vm3, %v474_v39 }
 0x483   :  { %v3128_v44 = vpop.eup %3127  ;;  %2908 = vmatpush3.msra.mxu1 %v651_v43  ;;  %2909 = vmatprep.mubr.msk.f32.mxu1 %vm3218_vm1, %v3217_v34 }
 0x484   :  { %v649_v45 = vmul.f32 %v3128_v44, %v3120_v24  ;;  %2917 = vmatprep.subr.mxu1 %v3217_v34  ;;  %v1036_v24 = vld [vmem:[%s3847_s10] sm:$0xff]  ;;  %v1153_v44 = vld [vmem:[%s3849_s12 + $0x38] sm:$0xff] }
 0x486   :  { %2910 = vmatmul.mubr.msk.f32.vlgmr.msra.gmra.mxu1 %vm296_vm3, %v649_v45  ;;  %v1152_v45 = vld [vmem:[%s3849_s12 + $0x30] sm:$0xff] }
 0x487   :  { %2919 = vmatprep.mubr.msk.f32.mxu1 %vm3218_vm1, %v3217_v34 }
 0x4aa   :  { %v814_v46 = vpop.xlane.xlu1 %813 }
 0x4ab   :  { %3129 = vrcp.f32 %v814_v46  ;;  %v1151_v46 = vld [vmem:[%s3849_s12 + $0x28] sm:$0xff] }
 0x4ae   :  { %v818_v47 = vpop.permute.xlu1 %817 }
 0x4af   :  { %2918 = vmatpush3.msra.mxu1 %v818_v47  ;;  %v1150_v47 = vld [vmem:[%s3849_s12 + $0x20] sm:$0xff] }
 0x4b8   :  { %v3130_v48 = vpop.eup %3129 }
 0x4b9   :  { %v816_v49 = vmul.f32 %v3130_v48, %v3122_v29  ;;  %v1149_v48 = vld [vmem:[%s3849_s12 + $0x18] sm:$0xff] }
 0x4bb   :  { %2920 = vmatmul.mubr.msk.f32.vlgmr.msra.gmra.mxu1 %vm296_vm3, %v816_v49  ;;  %v1148_v49 = vld [vmem:[%s3849_s12 + $0x10] sm:$0xff] }
 0x53e   :  { %v380_v55 = vpop.f32.mrf.mxu1 }
 0x540   :  { %v2891_v56 = vpop.f32.mrf.mxu1 }
 0x542   :  { %v547_v57 = vpop.f32.mrf.mxu1 }
 0x543   :  { %552 = vrot.lane.b32.xlu0 %v547_v57, %s3862_s26 }
 0x544   :  { %v2901_v58 = vpop.f32.mrf.mxu1 }
 0x546   :  { %v722_v59 = vpop.f32.mrf.mxu1 }
 0x548   :  { %v2911_v60 = vpop.f32.mrf.mxu1 }
 0x57b   :  { %v889_v61 = vpop.f32.mrf.mxu1 }
 0x57c   :  { %894 = vrot.lane.b32.xlu1 %v889_v61, %s3862_s26 }
 0x57d   :  { %v2921_v62 = vpop.f32.mrf.mxu1 }
 0x5b5   :  { %v553_v0 = vpop.permute.xlu0 %552 }
 0x5b6   :  { %v555_v1 = vsel %vm215_vm2, %v380_v55, %v553_v0 }
 0x5b7   :  { %2930 = vmatprep.mubr.msk.f32.mxu0 %vm73_vm0, %v555_v1 }
 0x5ee   :  { %v895_v2 = vpop.permute.xlu1 %894 }
 0x5ef   :  { %v897_v3 = vsel %vm215_vm2, %v722_v59, %v895_v2 }
 0x5f0   :  { %2931 = vmatmul.mubr.msk.f32.vlgmr.msra.gmra.mxu0 %vm73_vm0, %v897_v3 }
 0x6b0   :  { %v2932_v5 = vpop.f32.mrf.mxu0 }
 0x6b1   :  { %v987_v6 = vadd.f32 %v2932_v5, %v2689_v4 }
 0x6b2   :  { %v981_v7 = vpop.f32.mrf.mxu0 }
 0x6b3   :  { %v982_v8 = vadd.f32 %v2689_v4, %v981_v7  ;;  %v991_v9 = vadd.f32 %v987_v6, %v3369_v33 }
 0x6b5   :  { %v997_v10 = vsel %vm73_vm0, %v991_v9, 0.0  ;;  %v990_v11 = vadd.f32 %v982_v8, %v3365_v31  ;;  %v1039_v31 = vld [vmem:[%s3847_s10 + $0x18] sm:$0xff] }
 0x6b6   :  { %998 = vadd.xlane.f32.xlu1 %v997_v10  ;;  %2933 = vmatprep.subr.mxu0 %v1039_v31 }
 0x6b7   :  { %v994_v12 = vsel %vm73_vm0, %v990_v11, 0.0  ;;  %2934 = vmatpush3.msra.mxu0 %v1039_v31 }
 0x6b8   :  { %995 = vadd.xlane.f32.xlu0 %v994_v12  ;;  %2935 = vmatprep.subr.mxu0 %v1038_v22 }
 0x6b9   :  { %2936 = vmatpush3.msra.mxu0 %v1038_v22 }
 0x6ba   :  { %2937 = vmatprep.subr.mxu0 %v1037_v23 }
 0x6bb   :  { %2938 = vmatpush3.msra.mxu0 %v1037_v23 }
 0x6bc   :  { %2939 = vmatprep.subr.mxu0 %v1036_v24 }
 0x6bd   :  { %2940 = vmatpush3.msra.mxu0 %v1036_v24 }
 0x6be   :  { %2944 = vmatprep.subr.mxu0 %v1153_v44 }
 0x73f   :  { %v999_v13 = vpop.xlane.xlu1 %998 }
 0x740   :  { %v1001_v14 = vmul.f32 0.03125, %v999_v13  ;;  %v2697_v13 = vld [vmem:[%s3850_s13] ss:$0 sm:$0xff] }
 0x741   :  { %v996_v15 = vpop.xlane.xlu0 %995 }
 0x742   :  { %v1000_v16 = vmul.f32 0.03125, %v996_v15  ;;  %v1003_v17 = vsub.f32 %v991_v9, %v1001_v14 }
 0x744   :  { %v1002_v18 = vsub.f32 %v990_v11, %v1000_v16  ;;  %v1005_v21 = vmul.f32 %v1003_v17, %v1003_v17 }
 0x746   :  { %v1004_v19 = vmul.f32 %v1002_v18, %v1002_v18  ;;  %v1009_v33 = vsel %vm73_vm0, %v1005_v21, 0.0 }
 0x748   :  { %v1006_v20 = vsel %vm73_vm0, %v1004_v19, 0.0 }
 0x749   :  { %1007 = vadd.xlane.f32.xlu0 %v1006_v20 }
 0x74d   :  { %1010 = vadd.xlane.f32.xlu0 %v1009_v33 }
 0x7d2   :  { %v1008_v25 = vpop.xlane.xlu0 %1007 }
 0x7d3   :  { %v1012_v26 = vmul.f32 0.03125, %v1008_v25 }
 0x7d5   :  { %v1014_v27 = vadd.f32 1e-12, %v1012_v26 }
 0x7d6   :  { %v1011_v28 = vpop.xlane.xlu0 %1010 }
 0x7d7   :  { %3131 = vrsqrt.f32 %v1014_v27  ;;  %v1013_v29 = vmul.f32 0.03125, %v1011_v28 }
 0x7d9   :  { %v1015_v30 = vadd.f32 1e-12, %v1013_v29 }
 0x7db   :  { %3133 = vrsqrt.f32 %v1015_v30  ;;  %v2705_v30 = vld [vmem:[%s3871_s0 + $0x38] sm:$0xff] }
 0x7dc   :  { %2963 = vmatprep.subr.mxu1 %v2705_v30 }
 0x7dd   :  { %2964 = vmatpush3.msra.mxu1 %v2705_v30 }
 0x7e4   :  { %v3132_v32 = vpop.eup %3131 }
 0x7e5   :  { %v1018_v36 = vmul.f32 %v3132_v32, %v1002_v18  ;;  %v2704_v32 = vld [vmem:[%s3871_s0 + $0x30] sm:$0xff] }
 0x7e6   :  { %2965 = vmatprep.subr.mxu1 %v2704_v32 }
 0x7e7   :  { %v1026_v38 = vmul.f32 %v2692_v35, %v1018_v36  ;;  %2966 = vmatpush3.msra.mxu1 %v2704_v32  ;;  %v2702_v36 = vld [vmem:[%s3871_s0 + $0x20] sm:$0xff] }
 0x7e8   :  { %v3134_v40 = vpop.eup %3133 }
 0x7e9   :  { %v1019_v41 = vmul.f32 %v3134_v40, %v1003_v17  ;;  %v3502_v42 = vadd.f32 %v2693_v37, %v1026_v38 }
 0x7eb   :  { %v1027_v39 = vmul.f32 %v2692_v35, %v1019_v41  ;;  %2941 = vmatprep.mubr.msk.f32.mxu0 %vm73_vm0, %v3502_v42  ;;  %v2703_v35 = vld [vmem:[%s3871_s0 + $0x28] sm:$0xff] }
 0x7ec   :  { %2967 = vmatprep.subr.mxu1 %v2703_v35 }
 0x7ed   :  { %v1035_v43 = vadd.f32 %v2693_v37, %v1027_v39  ;;  %2968 = vmatpush3.msra.mxu1 %v2703_v35 }
 0x7ee   :  { %2969 = vmatprep.subr.mxu1 %v2702_v36 }
 0x7ef   :  { %2942 = vmatmul.mubr.msk.f32.vlgmr.msra.gmra.mxu0 %vm73_vm0, %v1035_v43  ;;  %2970 = vmatpush3.msra.mxu1 %v2702_v36 }
 0x7f0   :  { %2945 = vmatpush3.msra.mxu0 %v1153_v44  ;;  %2974 = vmatprep.subr.mxu1 %v3217_v34  ;;  %v2700_v44 = vld [vmem:[%s3851_s14] ss:$0 sm:$0xff] }
 0x7f1   :  { %2946 = vmatprep.subr.mxu0 %v1152_v45 }
 0x7f2   :  { %2947 = vmatpush3.msra.mxu0 %v1152_v45 }
 0x7f3   :  { %2948 = vmatprep.subr.mxu0 %v1151_v46 }
 0x7f4   :  { %2949 = vmatpush3.msra.mxu0 %v1151_v46 }
 0x7f5   :  { %2950 = vmatprep.subr.mxu0 %v1150_v47 }
 0x7f6   :  { %2951 = vmatpush3.msra.mxu0 %v1150_v47 }
 0x7f7   :  { %2952 = vmatprep.subr.mxu0 %v1149_v48 }
 0x7f8   :  { %2953 = vmatpush3.msra.mxu0 %v1149_v48 }
 0x7f9   :  { %2954 = vmatprep.subr.mxu0 %v1148_v49 }
 0x7fa   :  { %2955 = vmatpush3.msra.mxu0 %v1148_v49  ;;  %v2701_v49 = vld [vmem:[%s3852_s15] ss:$0 sm:$0xff] }
 0x7fb   :  { %2956 = vmatprep.subr.mxu0 %v1147_v50 }
 0x7fc   :  { %2957 = vmatpush3.msra.mxu0 %v1147_v50 }
 0x7fd   :  { %2958 = vmatprep.subr.mxu0 %v1146_v51 }
 0x7fe   :  { %2959 = vmatpush3.msra.mxu0 %v1146_v51 }
 0x7ff   :  { %2984 = vmatprep.subr.mxu0 %v3217_v34 }
 0x8af   :  { %v2943_v54 = vpop.f32.mrf.mxu0 }
 0x8b0   :  { %v1125_v55 = vadd.f32 %v2943_v54, %v2694_v53 }
 0x8b1   :  { %v1119_v56 = vpop.f32.mrf.mxu0 }
 0x8b2   :  { %v1131_v57 = vmul.f32 0.044715, %v1125_v55  ;;  %v1120_v58 = vadd.f32 %v2694_v53, %v1119_v56  ;;  %v1129_v10 = vmul.f32 0.5, %v1125_v55 }
 0x8b4   :  { %v1133_v59 = vmul.f32 %v1131_v57, %v1125_v55  ;;  %v1130_v60 = vmul.f32 0.044715, %v1120_v58  ;;  %v1128_v8 = vmul.f32 0.5, %v1120_v58 }
 0x8b6   :  { %v1135_v61 = vmul.f32 %v1133_v59, %v1125_v55  ;;  %v1132_v62 = vmul.f32 %v1130_v60, %v1120_v58 }
 0x8b8   :  { %v1137_v0 = vadd.f32 %v1135_v61, %v1125_v55  ;;  %v1134_v1 = vmul.f32 %v1132_v62, %v1120_v58  ;;  %v2707_v55 = vld [vmem:[%s3874_s4 + $0x1] ss:$0 sm:$0xff]  ;;  %s3225_s4 = smov [#allocation2]  }
 0x8ba   :  { %v1139_v2 = vmul.f32 0.7978846, %v1137_v0  ;;  %v1136_v3 = vadd.f32 %v1134_v1, %v1120_v58 }
 0x8bc   :  { %3135 = vtanh.f32 %v1139_v2  ;;  %v1138_v4 = vmul.f32 0.7978846, %v1136_v3 }
 0x8be   :  { %3137 = vtanh.f32 %v1138_v4 }
 0x8c9   :  { %v3136_v5 = vpop.eup %3135 }
 0x8ca   :  { %v1143_v7 = vadd.f32 1.0, %v3136_v5 }
 0x8cb   :  { %v3138_v6 = vpop.eup %3137 }
 0x8cc   :  { %v1142_v9 = vadd.f32 1.0, %v3138_v6  ;;  %v1145_v12 = vmul.f32 %v1143_v7, %v1129_v10 }
 0x8ce   :  { %v1144_v11 = vmul.f32 %v1142_v9, %v1128_v8 }
 0x8d0   :  { %2960 = vmatprep.mubr.msk.f32.mxu0 %vm1161_vm4, %v1144_v11 }
 0x8d1   :  { %2961 = vmatmul.mubr.msk.f32.vlgmr.msra.gmra.mxu0 %vm1161_vm4, %v1145_v12 }
 0x8d2   :  { %2986 = vmatprep.mubr.msk.f32.mxu0 %vm3218_vm1, %v3217_v34 }
 0x991   :  { %v2962_v14 = vpop.f32.mrf.mxu0 }
 0x992   :  { %v1240_v15 = vadd.f32 %v2962_v14, %v2697_v13 }
 0x993   :  { %v1234_v16 = vpop.f32.mrf.mxu0 }
 0x994   :  { %v1235_v17 = vadd.f32 %v2697_v13, %v1234_v16  ;;  %v1244_v18 = vadd.f32 %v1240_v15, %v1035_v43 }
 0x996   :  { %v1250_v19 = vsel %vm73_vm0, %v1244_v18, 0.0  ;;  %v1243_v20 = vadd.f32 %v1235_v17, %v3502_v42 }
 0x997   :  { %1251 = vadd.xlane.f32.xlu1 %v1250_v19 }
 0x998   :  { %v1247_v21 = vsel %vm73_vm0, %v1243_v20, 0.0 }
 0x999   :  { %1248 = vadd.xlane.f32.xlu0 %v1247_v21 }
 0xa20   :  { %v1252_v33 = vpop.xlane.xlu1 %1251 }
 0xa21   :  { %v1254_v31 = vmul.f32 0.03125, %v1252_v33 }
 0xa22   :  { %v1249_v22 = vpop.xlane.xlu0 %1248 }
 0xa23   :  { %v1256_v23 = vsub.f32 %v1244_v18, %v1254_v31  ;;  %v1253_v24 = vmul.f32 0.03125, %v1249_v22 }
 0xa25   :  { %v1255_v25 = vsub.f32 %v1243_v20, %v1253_v24  ;;  %v1258_v26 = vmul.f32 %v1256_v23, %v1256_v23 }
 0xa27   :  { %v1262_v27 = vsel %vm73_vm0, %v1258_v26, 0.0  ;;  %v1257_v28 = vmul.f32 %v1255_v25, %v1255_v25 }
 0xa28   :  { %1263 = vadd.xlane.f32.xlu1 %v1262_v27 }
 0xa29   :  { %v1259_v29 = vsel %vm73_vm0, %v1257_v28, 0.0 }
 0xa2a   :  { %1260 = vadd.xlane.f32.xlu0 %v1259_v29 }
 0xab1   :  { %v1264_v37 = vpop.xlane.xlu1 %1263 }
 0xab2   :  { %v1266_v38 = vmul.f32 0.03125, %v1264_v37 }
 0xab3   :  { %v1261_v40 = vpop.xlane.xlu0 %1260 }
 0xab4   :  { %v1268_v41 = vadd.f32 1e-12, %v1266_v38  ;;  %v1265_v42 = vmul.f32 0.03125, %v1261_v40 }
 0xab6   :  { %3139 = vrsqrt.f32 %v1268_v41  ;;  %v1267_v39 = vadd.f32 1e-12, %v1265_v42 }
 0xab8   :  { %3141 = vrsqrt.f32 %v1267_v39 }
 0xac3   :  { %v3140_v43 = vpop.eup %3139 }
 0xac4   :  { %v1272_v45 = vmul.f32 %v3140_v43, %v1256_v23 }
 0xac5   :  { %v3142_v46 = vpop.eup %3141 }
 0xac6   :  { %v1271_v47 = vmul.f32 %v3142_v46, %v1255_v25  ;;  %v1280_v48 = vmul.f32 %v2700_v44, %v1272_v45 }
 0xac8   :  { %v1279_v50 = vmul.f32 %v2700_v44, %v1271_v47  ;;  %v3568_v53 = vadd.f32 %v2701_v49, %v1280_v48 }
 0xaca   :  { %v3566_v51 = vadd.f32 %v2701_v49, %v1279_v50 }
 0xacc   :  { %2971 = vmatprep.mubr.msk.f32.mxu1 %vm73_vm0, %v3566_v51 }
 0xacd   :  { %2972 = vmatmul.mubr.msk.f32.vlgmr.msra.gmra.mxu1 %vm73_vm0, %v3568_v53 }
 0xace   :  { %2976 = vmatprep.mubr.msk.f32.mxu1 %vm3218_vm1, %v3217_v34 }
 0xb8d   :  { %v2973_v54 = vpop.f32.mrf.mxu1 }
 0xb8e   :  { %v3585_v58 = vadd.f32 %v2973_v54, %v2707_v55 }
 0xb8f   :  { %v1374_v56 = vpop.f32.mrf.mxu1 }
 0xb90   :  { %v3579_v57 = vadd.f32 %v2707_v55, %v1374_v56 }
 0xb92   :  { %1551 = vrot.lane.b32.xlu1 %v3579_v57, %s3219_s30  ;;  %1384 = vrot.lane.b32.xlu0 %v3579_v57, %s3220_s5 }
 0xb96   :  { %1549 = vrot.lane.b32.xlu1 %v3579_v57, %s3221_s22  ;;  %1889 = vrot.lane.b32.xlu0 %v3585_v58, %s3219_s30  ;;  %s2650_s30 = sshll.u32 %s3225_s4, 4  ;;  %s2651_s30 = int_to_ptr.vmem [resolvable:$true] %s2650_s30 }
 0xb97   :  { %p3178_p1 = scmp.lt.s32.totalorder %s2651_s30, %s2651_s30 }
 0xb9a   :  { %1722 = vrot.lane.b32.xlu1 %v3585_v58, %s3220_s5  ;;  %s3173_s5 = scalar_lea.vmem %s2651_s30, 32 }
 0xb9b   :  { %p3174_p0 = scmp.ne.s32.totalorder %s2651_s30, %s3173_s5  ;;  %p3179_p2 = scmp.lt.s32.totalorder %s3173_s5, %s3173_s5 }
 0xb9d   :  { %p3180_p3 = por %p3179_p2, %p3178_p1 }
 0xb9e   :  { %1887 = vrot.lane.b32.xlu1 %v3585_v58, %s3221_s22 }
 0xb9f   :  { %p3181_p4 = pnand %p3180_p3, %p3174_p0 }
 0xc04   :  { %v1552_v59 = vpop.permute.xlu1 %1551  ;;  %v1385_v60 = vpop.permute.xlu0 %1384 }
 0xc05   :  { %2975 = vmatpush3.xpose.msk.msra.mxu1 %vm215_vm2, %v1385_v60  ;;  %2985 = vmatpush3.xpose.msk.msra.mxu0 %vm215_vm2, %v1552_v59  ;;  %v2725_v60 = vld [vmem:[%s3843_s6 + $0x38] sm:$0xff] }
 0xc06   :  { %2994 = vmatprep.subr.mxu0 %v3217_v34  ;;  %2979 = vmatprep.subr.mxu1 %v3217_v34 }
 0xc08   :  { %v1550_v61 = vpop.permute.xlu1 %1549  ;;  %2977 = vmatmul.mubr.msk.f32.vlgmr.msra.gmra.mxu1 %vm215_vm2, %v3579_v57  ;;  %v1890_v0 = vpop.permute.xlu0 %1889 }
 0xc09   :  { %2987 = vmatmul.mubr.msk.f32.vlgmr.msra.gmra.mxu0 %vm215_vm2, %v1550_v61  ;;  %2981 = vmatprep.mubr.msk.f32.mxu1 %vm3218_vm1, %v3217_v34  ;;  %v2724_v61 = vld [vmem:[%s3843_s6 + $0x30] sm:$0xff] }
 0xc0a   :  { %2996 = vmatprep.mubr.msk.f32.mxu0 %vm3218_vm1, %v3217_v34 }
 0xc0c   :  { %v1723_v62 = vpop.permute.xlu1 %1722 }
 0xc0d   :  { %2995 = vmatpush3.xpose.msk.msra.mxu0 %vm215_vm2, %v1723_v62  ;;  %v2723_v62 = vld [vmem:[%s3843_s6 + $0x28] sm:$0xff] }
 0xc0e   :  { %3004 = vmatprep.subr.mxu0 %v3217_v34 }
 0xc10   :  { %2997 = vmatmul.mubr.msk.f32.vlgmr.msra.gmra.mxu0 %vm215_vm2, %v3585_v58  ;;  %v1888_v1 = vpop.permute.xlu1 %1887 }
 0xc11   :  { %3005 = vmatpush3.xpose.msk.msra.mxu0 %vm215_vm2, %v1890_v0  ;;  %3006 = vmatprep.mubr.msk.f32.mxu0 %vm3218_vm1, %v3217_v34  ;;  %v2722_v0 = vld [vmem:[%s3843_s6 + $0x20] sm:$0xff] }
 0xc12   :  { %3014 = vmatprep.subr.mxu0 %v2725_v60 }
 0xc14   :  { %3007 = vmatmul.mubr.msk.f32.vlgmr.msra.gmra.mxu0 %vm215_vm2, %v1888_v1 }
 0xc15   :  { %3015 = vmatpush3.msra.mxu0 %v2725_v60  ;;  %v2739_v60 = vld [vmem:[%s3848_s11 + $0x1] ss:$0 sm:$0xff] }
 0xc16   :  { %3016 = vmatprep.subr.mxu0 %v2724_v61 }
 0xc17   :  { %3017 = vmatpush3.msra.mxu0 %v2724_v61 }
 0xc18   :  { %3018 = vmatprep.subr.mxu0 %v2723_v62 }
 0xc19   :  { %3019 = vmatpush3.msra.mxu0 %v2723_v62 }
 0xc1a   :  { %3020 = vmatprep.subr.mxu0 %v2722_v0 }
 0xc1b   :  { %3021 = vmatpush3.msra.mxu0 %v2722_v0 }
 0xcc8   :  { %v1456_v2 = vpop.f32.mrf.mxu1 }
 0xcc9   :  { %v1460_v3 = vmul.f32 0.25, %v1456_v2  ;;  %v1623_v4 = vpop.f32.mrf.mxu0 }
 0xcca   :  { %v1627_v5 = vmul.f32 0.25, %v1623_v4  ;;  %v2978_v6 = vpop.f32.mrf.mxu1 }
 0xccb   :  { %v2988_v7 = vpop.f32.mrf.mxu0  ;;  %v1461_v8 = vadd.f32 %v1460_v3, %v3420_v52 }
 0xccc   :  { %v1628_v9 = vadd.f32 %v1627_v5, %v3420_v52 }
 0xccd   :  { %v1462_v10 = vsel %vm296_vm3, %v1461_v8, -inf }
 0xcce   :  { %1463 = vmax.xlane.f32.xlu0 %v1462_v10  ;;  %v1629_v11 = vsel %vm296_vm3, %v1628_v9, -inf }
 0xccf   :  { %1630 = vmax.xlane.f32.xlu1 %v1629_v11 }
 0xcd0   :  { %v1794_v12 = vpop.f32.mrf.mxu0 }
 0xcd1   :  { %v1798_v13 = vmul.f32 0.25, %v1794_v12 }
 0xcd2   :  { %v2998_v14 = vpop.f32.mrf.mxu0 }
 0xcd3   :  { %v1799_v15 = vadd.f32 %v1798_v13, %v3425_v63  ;;  %v2727_v13 = vld [vmem:[%s3844_s7 + $0x1] ss:$0 sm:$0xff] }
 0xcd4   :  { %v1961_v16 = vpop.f32.mrf.mxu0 }
 0xcd5   :  { %v1965_v17 = vmul.f32 0.25, %v1961_v16  ;;  %v1800_v18 = vsel %vm296_vm3, %v1799_v15, -inf }
 0xcd6   :  { %1801 = vmax.xlane.f32.xlu0 %v1800_v18  ;;  %v3008_v19 = vpop.f32.mrf.mxu0 }
 0xcd7   :  { %v1966_v20 = vadd.f32 %v1965_v17, %v3425_v63 }
 0xcd9   :  { %v1967_v52 = vsel %vm296_vm3, %v1966_v20, -inf }
 0xcda   :  { %1968 = vmax.xlane.f32.xlu0 %v1967_v52 }
 0xd57   :  { %v1464_v21 = vpop.xlane.xlu0 %1463 }
 0xd58   :  { %v1465_v33 = vsub.f32 %v1461_v8, %v1464_v21  ;;  %v1631_v31 = vpop.xlane.xlu1 %1630 }
 0xd59   :  { %v1632_v22 = vsub.f32 %v1628_v9, %v1631_v31 }
 0xd5a   :  { %v1466_v23 = vmul.f32 1.442695, %v1465_v33 }
 0xd5b   :  { %v1633_v24 = vmul.f32 1.442695, %v1632_v22 }
 0xd5c   :  { %3143 = vpow2.f32 %v1466_v23 }
 0xd5d   :  { %3145 = vpow2.f32 %v1633_v24 }
 0xd5f   :  { %v1802_v25 = vpop.xlane.xlu0 %1801 }
 0xd60   :  { %v1803_v26 = vsub.f32 %v1799_v15, %v1802_v25 }
 0xd62   :  { %v1804_v27 = vmul.f32 1.442695, %v1803_v26 }
 0xd63   :  { %v1969_v36 = vpop.xlane.xlu0 %1968 }
 0xd64   :  { %3147 = vpow2.f32 %v1804_v27  ;;  %v1970_v37 = vsub.f32 %v1966_v20, %v1969_v36 }
 0xd66   :  { %v1971_v38 = vmul.f32 1.442695, %v1970_v37 }
 0xd68   :  { %3149 = vpow2.f32 %v1971_v38 }
 0xd69   :  { %v3144_v28 = vpop.eup %3143 }
 0xd6a   :  { %v3146_v29 = vpop.eup %3145  ;;  %v1468_v30 = vsel %vm296_vm3, %v3144_v28, 0.0 }
 0xd6b   :  { %1469 = vadd.xlane.f32.xlu0 %v1468_v30  ;;  %v1635_v63 = vsel %vm296_vm3, %v3146_v29, 0.0  ;;  %v2734_v30 = vld [vmem:[%s3847_s10 + $0x20] sm:$0xff] }
 0xd6c   :  { %1636 = vadd.xlane.f32.xlu1 %v1635_v63 }
 0xd71   :  { %v3148_v32 = vpop.eup %3147 }
 0xd72   :  { %v1806_v35 = vsel %vm296_vm3, %v3148_v32, 0.0 }
 0xd73   :  { %1807 = vadd.xlane.f32.xlu0 %v1806_v35 }
 0xd75   :  { %v3150_v40 = vpop.eup %3149 }
 0xd76   :  { %v1973_v41 = vsel %vm296_vm3, %v3150_v40, 0.0 }
 0xd7d   :  { %1640 = vrot.lane.b32.xlu1 %v3579_v57, %s3222_s2 }
 0xd81   :  { %1811 = vrot.lane.b32.xlu1 %v3585_v58, %s3223_s25 }
 0xd89   :  { %1473 = vrot.lane.b32.xlu0 %v3579_v57, %s3223_s25 }
 0xda5   :  { %1974 = vadd.xlane.f32.xlu1 %v1973_v41  ;;  %v2732_v41 = vld [vmem:[%s3845_s8 + $0x1] ss:$0 sm:$0xff] }
 0xdb6   :  { %1978 = vrot.lane.b32.xlu1 %v3585_v58, %s3222_s2 }
 0xdf4   :  { %v1470_v42 = vpop.xlane.xlu0 %1469 }
 0xdf5   :  { %3151 = vrcp.f32 %v1470_v42  ;;  %v1637_v39 = vpop.xlane.xlu1 %1636 }
 0xdf6   :  { %3153 = vrcp.f32 %v1637_v39  ;;  %v2733_v39 = vld [vmem:[%s3846_s9 + $0x1] ss:$0 sm:$0xff] }
 0xdf9   :  { %v1641_v46 = vpop.permute.xlu1 %1640 }
 0xdfc   :  { %v1808_v43 = vpop.xlane.xlu0 %1807 }
 0xdfd   :  { %3155 = vrcp.f32 %v1808_v43  ;;  %v1812_v50 = vpop.permute.xlu1 %1811 }
 0xe00   :  { %v1474_v44 = vpop.permute.xlu0 %1473 }
 0xe01   :  { %2980 = vmatpush3.msra.mxu1 %v1474_v44 }
 0xe02   :  { %v3152_v45 = vpop.eup %3151  ;;  %2989 = vmatprep.subr.mxu1 %v3217_v34 }
 0xe03   :  { %v1472_v47 = vmul.f32 %v3152_v45, %v3144_v28  ;;  %v3154_v48 = vpop.eup %3153  ;;  %v2736_v28 = vld [vmem:[%s3847_s10 + $0x30] sm:$0xff] }
 0xe04   :  { %v1639_v49 = vmul.f32 %v3154_v48, %v3146_v29  ;;  %v2735_v29 = vld [vmem:[%s3847_s10 + $0x28] sm:$0xff] }
 0xe05   :  { %2982 = vmatmul.mubr.msk.f32.vlgmr.msra.gmra.mxu1 %vm296_vm3, %v1472_v47 }
 0xe06   :  { %2990 = vmatpush3.msra.mxu1 %v1641_v46  ;;  %2991 = vmatprep.mubr.msk.f32.mxu1 %vm3218_vm1, %v3217_v34 }
 0xe07   :  { %2999 = vmatprep.subr.mxu1 %v3217_v34 }
 0xe09   :  { %2992 = vmatmul.mubr.msk.f32.vlgmr.msra.gmra.mxu1 %vm296_vm3, %v1639_v49  ;;  %v2749_v49 = vld [vmem:[%s3849_s12 + $0x78] sm:$0xff] }
 0xe0a   :  { %v3156_v54 = vpop.eup %3155  ;;  %3000 = vmatpush3.msra.mxu1 %v1812_v50  ;;  %3001 = vmatprep.mubr.msk.f32.mxu1 %vm3218_vm1, %v3217_v34  ;;  %v2748_v50 = vld [vmem:[%s3849_s12 + $0x70] sm:$0xff] }
 0xe0b   :  { %v1810_v55 = vmul.f32 %v3156_v54, %v3148_v32  ;;  %3009 = vmatprep.subr.mxu1 %v3217_v34  ;;  %3036 = vmatprep.subr.mxu0 %v2749_v49  ;;  %v2747_v54 = vld [vmem:[%s3849_s12 + $0x68] sm:$0xff] }
 0xe0d   :  { %3002 = vmatmul.mubr.msk.f32.vlgmr.msra.gmra.mxu1 %vm296_vm3, %v1810_v55  ;;  %v2746_v55 = vld [vmem:[%s3849_s12 + $0x60] sm:$0xff] }
 0xe0e   :  { %3011 = vmatprep.mubr.msk.f32.mxu1 %vm3218_vm1, %v3217_v34 }
 0xe2e   :  { %v1975_v56 = vpop.xlane.xlu1 %1974 }
 0xe2f   :  { %3157 = vrcp.f32 %v1975_v56  ;;  %v2745_v56 = vld [vmem:[%s3849_s12 + $0x58] sm:$0xff] }
 0xe32   :  { %v1979_v57 = vpop.permute.xlu1 %1978 }
 0xe33   :  { %3010 = vmatpush3.msra.mxu1 %v1979_v57  ;;  %v2744_v57 = vld [vmem:[%s3849_s12 + $0x50] sm:$0xff] }
 0xe3c   :  { %v3158_v58 = vpop.eup %3157 }
 0xe3d   :  { %v1977_v59 = vmul.f32 %v3158_v58, %v3150_v40  ;;  %v2743_v58 = vld [vmem:[%s3849_s12 + $0x48] sm:$0xff] }
 0xe3f   :  { %3012 = vmatmul.mubr.msk.f32.vlgmr.msra.gmra.mxu1 %vm296_vm3, %v1977_v59  ;;  %v2742_v59 = vld [vmem:[%s3849_s12 + $0x40] sm:$0xff] }
 0xec5   :  { %v1545_v1 = vpop.f32.mrf.mxu1 }
 0xec7   :  { %v2983_v2 = vpop.f32.mrf.mxu1 }
 0xec9   :  { %v1712_v3 = vpop.f32.mrf.mxu1 }
 0xeca   :  { %1717 = vrot.lane.b32.xlu0 %v1712_v3, %s3876_s3 }
 0xecb   :  { %v2993_v4 = vpop.f32.mrf.mxu1 }
 0xecd   :  { %v1883_v5 = vpop.f32.mrf.mxu1 }
 0xecf   :  { %v3003_v6 = vpop.f32.mrf.mxu1 }
 0xeff   :  { %v2050_v7 = vpop.f32.mrf.mxu1 }
 0xf00   :  { %2055 = vrot.lane.b32.xlu1 %v2050_v7, %s3876_s3 }
 0xf01   :  { %v3013_v8 = vpop.f32.mrf.mxu1 }
 0xf3c   :  { %v1718_v9 = vpop.permute.xlu0 %1717 }
 0xf3d   :  { %v1720_v10 = vsel %vm215_vm2, %v1545_v1, %v1718_v9 }
 0xf3e   :  { %3022 = vmatprep.mubr.msk.f32.mxu0 %vm73_vm0, %v1720_v10 }
 0xf72   :  { %v2056_v11 = vpop.permute.xlu1 %2055 }
 0xf73   :  { %v2058_v12 = vsel %vm215_vm2, %v1883_v5, %v2056_v11 }
 0xf74   :  { %3023 = vmatmul.mubr.msk.f32.vlgmr.msra.gmra.mxu0 %vm73_vm0, %v2058_v12 }
 0xf75   :  { %3037 = vmatpush3.msra.mxu0 %v2749_v49 }
 0xf76   :  { %3038 = vmatprep.subr.mxu0 %v2748_v50 }
 0xf77   :  { %3039 = vmatpush3.msra.mxu0 %v2748_v50  ;;  %v2757_v50 = vld [vmem:[%s3852_s15 + $0x1] ss:$0 sm:$0xff] }
 0xf78   :  { %3040 = vmatprep.subr.mxu0 %v2747_v54 }
 0xf79   :  { %3041 = vmatpush3.msra.mxu0 %v2747_v54 }
 0xf7a   :  { %3042 = vmatprep.subr.mxu0 %v2746_v55 }
 0xf7b   :  { %3043 = vmatpush3.msra.mxu0 %v2746_v55 }
 0xf7c   :  { %3044 = vmatprep.subr.mxu0 %v2745_v56 }
 0xf7d   :  { %3045 = vmatpush3.msra.mxu0 %v2745_v56 }
 0xf7e   :  { %3046 = vmatprep.subr.mxu0 %v2744_v57 }
 0xf7f   :  { %3047 = vmatpush3.msra.mxu0 %v2744_v57 }
 0xf80   :  { %3048 = vmatprep.subr.mxu0 %v2743_v58 }
 0xf81   :  { %3049 = vmatpush3.msra.mxu0 %v2743_v58 }
 0xf82   :  { %3050 = vmatprep.subr.mxu0 %v2742_v59 }
 0xf83   :  { %3051 = vmatpush3.msra.mxu0 %v2742_v59 }
0x1034   :  { %v3024_v14 = vpop.f32.mrf.mxu0 }
0x1035   :  { %v2150_v15 = vadd.f32 %v3024_v14, %v2727_v13 }
0x1036   :  { %v2144_v16 = vpop.f32.mrf.mxu0 }
0x1037   :  { %v2145_v17 = vadd.f32 %v2727_v13, %v2144_v16  ;;  %v2154_v18 = vadd.f32 %v2150_v15, %v3568_v53 }
0x1039   :  { %v2162_v19 = vsel %vm73_vm0, %v2154_v18, 0.0  ;;  %v2153_v20 = vadd.f32 %v2145_v17, %v3566_v51  ;;  %v2737_v51 = vld [vmem:[%s3847_s10 + $0x38] sm:$0xff] }
0x103a   :  { %2163 = vadd.xlane.f32.xlu1 %v2162_v19  ;;  %3025 = vmatprep.subr.mxu1 %v2737_v51 }
0x103b   :  { %v2159_v52 = vsel %vm73_vm0, %v2153_v20, 0.0  ;;  %3026 = vmatpush3.msra.mxu1 %v2737_v51 }
0x103c   :  { %2160 = vadd.xlane.f32.xlu0 %v2159_v52  ;;  %3027 = vmatprep.subr.mxu1 %v2736_v28 }
0x103d   :  { %3028 = vmatpush3.msra.mxu1 %v2736_v28 }
0x103e   :  { %3029 = vmatprep.subr.mxu1 %v2735_v29 }
0x103f   :  { %3030 = vmatpush3.msra.mxu1 %v2735_v29 }
0x1040   :  { %3031 = vmatprep.subr.mxu1 %v2734_v30 }
0x1041   :  { %3032 = vmatpush3.msra.mxu1 %v2734_v30 }
0x1042   :  { %3055 = vmatprep.subr.mxu1 %v3217_v34 }
0x10c3   :  { %v2164_v21 = vpop.xlane.xlu1 %2163 }
0x10c4   :  { %v2166_v33 = vmul.f32 0.03125, %v2164_v21 }
0x10c5   :  { %v2161_v31 = vpop.xlane.xlu0 %2160 }
0x10c6   :  { %v2165_v22 = vmul.f32 0.03125, %v2161_v31  ;;  %v2168_v23 = vsub.f32 %v2154_v18, %v2166_v33 }
0x10c8   :  { %v2167_v24 = vsub.f32 %v2153_v20, %v2165_v22  ;;  %v2170_v27 = vmul.f32 %v2168_v23, %v2168_v23  ;;  %v2751_v20 = vld [vmem:[%s3850_s13 + $0x1] ss:$0 sm:$0xff] }
0x10ca   :  { %v2169_v25 = vmul.f32 %v2167_v24, %v2167_v24  ;;  %v2174_v53 = vsel %vm73_vm0, %v2170_v27, 0.0 }
0x10cc   :  { %v2171_v26 = vsel %vm73_vm0, %v2169_v25, 0.0 }
0x10cd   :  { %2172 = vadd.xlane.f32.xlu0 %v2171_v26 }
0x10d1   :  { %2175 = vadd.xlane.f32.xlu0 %v2174_v53 }
0x1156   :  { %v2173_v63 = vpop.xlane.xlu0 %2172 }
0x1157   :  { %v2177_v32 = vmul.f32 0.03125, %v2173_v63 }
0x1159   :  { %v2179_v35 = vadd.f32 1e-12, %v2177_v32 }
0x115a   :  { %v2176_v36 = vpop.xlane.xlu0 %2175 }
0x115b   :  { %3159 = vrsqrt.f32 %v2179_v35  ;;  %v2178_v37 = vmul.f32 0.03125, %v2176_v36  ;;  %v2467_v36 = vld [vmem:[%s3853_s16 + $0x18] sm:$0xff] }
0x115d   :  { %v2180_v38 = vadd.f32 1e-12, %v2178_v37  ;;  %v2466_v37 = vld [vmem:[%s3853_s16 + $0x10] sm:$0xff] }
0x115f   :  { %3161 = vrsqrt.f32 %v2180_v38  ;;  %v2465_v38 = vld [vmem:[%s3853_s16 + $0x8] sm:$0xff] }
0x1168   :  { %v3160_v40 = vpop.eup %3159 }
0x1169   :  { %v2183_v42 = vmul.f32 %v3160_v40, %v2167_v24  ;;  %v2464_v40 = vld [vmem:[%s3853_s16] sm:$0xff] }
0x116b   :  { %v2191_v43 = vmul.f32 %v2732_v41, %v2183_v42 }
0x116c   :  { %v3162_v44 = vpop.eup %3161 }
0x116d   :  { %v2184_v45 = vmul.f32 %v3162_v44, %v2168_v23  ;;  %v3693_v46 = vadd.f32 %v2733_v39, %v2191_v43 }
0x116f   :  { %v2192_v47 = vmul.f32 %v2732_v41, %v2184_v45  ;;  %3033 = vmatprep.mubr.msk.f32.mxu1 %vm73_vm0, %v3693_v46 }
0x1171   :  { %v2200_v48 = vadd.f32 %v2733_v39, %v2192_v47  ;;  %v2756_v47 = vld [vmem:[%s3851_s14 + $0x1] ss:$0 sm:$0xff] }
0x1173   :  { %3034 = vmatmul.mubr.msk.f32.vlgmr.msra.gmra.mxu1 %vm73_vm0, %v2200_v48 }
0x1174   :  { %3063 = vmatprep.mubr.msk.f32.mxu1 %vm3218_vm1, %v3217_v34  ;;  %3056 = vmatpush3.msra.mxu1 %v2467_v36 }
0x1175   :  { %3057 = vmatprep.subr.mxu1 %v3217_v34 }
0x1176   :  { %3058 = vmatpush3.msra.mxu1 %v2466_v37 }
0x1177   :  { %3059 = vmatprep.subr.mxu1 %v3217_v34 }
0x1178   :  { %3060 = vmatpush3.msra.mxu1 %v2465_v38 }
0x1179   :  { %3061 = vmatprep.subr.mxu1 %v3217_v34 }
0x117a   :  { %3062 = vmatpush3.msra.mxu1 %v2464_v40 }
0x117b   :  { %3066 = vmatprep.subr.mxu1 %v3217_v34 }
0x1233   :  { %v3035_v61 = vpop.f32.mrf.mxu1 }
0x1234   :  { %v2292_v62 = vadd.f32 %v3035_v61, %v2739_v60 }
0x1235   :  { %v2286_v0 = vpop.f32.mrf.mxu1 }
0x1236   :  { %v2298_v1 = vmul.f32 0.044715, %v2292_v62  ;;  %v2287_v2 = vadd.f32 %v2739_v60, %v2286_v0  ;;  %v2296_v17 = vmul.f32 0.5, %v2292_v62  ;;  %v2564_v60 = vld [vmem:[%s3855_s18 + $0x78] sm:$0xff]  ;;  %v2562_v0 = vld [vmem:[%s3855_s18 + $0x68] sm:$0xff] }
0x1238   :  { %v2300_v3 = vmul.f32 %v2298_v1, %v2292_v62  ;;  %v2297_v4 = vmul.f32 0.044715, %v2287_v2  ;;  %v2295_v15 = vmul.f32 0.5, %v2287_v2  ;;  %v2561_v1 = vld [vmem:[%s3855_s18 + $0x60] sm:$0xff] }
0x123a   :  { %v2302_v5 = vmul.f32 %v2300_v3, %v2292_v62  ;;  %v2299_v6 = vmul.f32 %v2297_v4, %v2287_v2  ;;  %v2559_v3 = vld [vmem:[%s3855_s18 + $0x50] sm:$0xff]  ;;  %v2558_v4 = vld [vmem:[%s3855_s18 + $0x48] sm:$0xff] }
0x123c   :  { %v2304_v7 = vadd.f32 %v2302_v5, %v2292_v62  ;;  %v2301_v8 = vmul.f32 %v2299_v6, %v2287_v2  ;;  %v2563_v62 = vld [vmem:[%s3855_s18 + $0x70] sm:$0xff]  ;;  %v2557_v5 = vld [vmem:[%s3855_s18 + $0x40] sm:$0xff]  ;;  %v2556_v6 = vld [vmem:[%s3855_s18 + $0x38] sm:$0xff] }
0x123e   :  { %v2306_v9 = vmul.f32 0.7978846, %v2304_v7  ;;  %v2303_v10 = vadd.f32 %v2301_v8, %v2287_v2  ;;  %v2560_v2 = vld [vmem:[%s3855_s18 + $0x58] sm:$0xff]  ;;  %v2555_v7 = vld [vmem:[%s3855_s18 + $0x30] sm:$0xff]  ;;  %v2554_v8 = vld [vmem:[%s3855_s18 + $0x28] sm:$0xff] }
0x1240   :  { %3163 = vtanh.f32 %v2306_v9  ;;  %v2305_v11 = vmul.f32 0.7978846, %v2303_v10  ;;  %v2553_v9 = vld [vmem:[%s3855_s18 + $0x20] sm:$0xff]  ;;  %v2552_v10 = vld [vmem:[%s3855_s18 + $0x18] sm:$0xff] }
0x1242   :  { %3165 = vtanh.f32 %v2305_v11  ;;  %v2551_v11 = vld [vmem:[%s3855_s18 + $0x10] sm:$0xff] }
0x124d   :  { %v3164_v12 = vpop.eup %3163 }
0x124e   :  { %v2310_v14 = vadd.f32 1.0, %v3164_v12  ;;  %v2550_v12 = vld [vmem:[%s3855_s18 + $0x8] sm:$0xff] }
0x124f   :  { %v3166_v13 = vpop.eup %3165 }
0x1250   :  { %v2309_v16 = vadd.f32 1.0, %v3166_v13  ;;  %v2312_v19 = vmul.f32 %v2310_v14, %v2296_v17  ;;  %v2549_v13 = vld [vmem:[%s3855_s18] sm:$0xff] }
0x1251   :  { %v2758_v14 = vld [vmem:[%s3854_s17] ss:$0 sm:$0xff] }
0x1252   :  { %v2311_v18 = vmul.f32 %v2309_v16, %v2295_v15 }
0x1254   :  { %3052 = vmatprep.mubr.msk.f32.mxu0 %vm1161_vm4, %v2311_v18 }
0x1255   :  { %3053 = vmatmul.mubr.msk.f32.vlgmr.msra.gmra.mxu0 %vm1161_vm4, %v2312_v19 }
0x1315   :  { %v3054_v52 = vpop.f32.mrf.mxu0 }
0x1316   :  { %v2408_v21 = vadd.f32 %v3054_v52, %v2751_v20 }
0x1317   :  { %v2402_v33 = vpop.f32.mrf.mxu0 }
0x1318   :  { %v2403_v31 = vadd.f32 %v2751_v20, %v2402_v33  ;;  %v2412_v22 = vadd.f32 %v2408_v21, %v2200_v48 }
0x131a   :  { %v2420_v23 = vsel %vm73_vm0, %v2412_v22, 0.0  ;;  %v2411_v24 = vadd.f32 %v2403_v31, %v3693_v46 }
0x131b   :  { %2421 = vadd.xlane.f32.xlu0 %v2420_v23 }
0x131c   :  { %v2417_v25 = vsel %vm73_vm0, %v2411_v24, 0.0 }
0x131d   :  { %2418 = vadd.xlane.f32.xlu1 %v2417_v25 }
0x13a4   :  { %v2422_v26 = vpop.xlane.xlu0 %2421 }
0x13a5   :  { %v2424_v27 = vmul.f32 0.03125, %v2422_v26 }
0x13a6   :  { %v2419_v53 = vpop.xlane.xlu1 %2418 }
0x13a7   :  { %v2426_v51 = vsub.f32 %v2412_v22, %v2424_v27  ;;  %v2423_v28 = vmul.f32 0.03125, %v2419_v53 }
0x13a9   :  { %v2425_v29 = vsub.f32 %v2411_v24, %v2423_v28  ;;  %v2428_v30 = vmul.f32 %v2426_v51, %v2426_v51 }
0x13ab   :  { %v2432_v63 = vsel %vm73_vm0, %v2428_v30, 0.0  ;;  %v2427_v32 = vmul.f32 %v2425_v29, %v2425_v29 }
0x13ac   :  { %2433 = vadd.xlane.f32.xlu0 %v2432_v63 }
0x13ad   :  { %v2429_v35 = vsel %vm73_vm0, %v2427_v32, 0.0 }
0x13ae   :  { %2430 = vadd.xlane.f32.xlu1 %v2429_v35 }
0x1435   :  { %v2434_v41 = vpop.xlane.xlu0 %2433 }
0x1436   :  { %v2436_v42 = vmul.f32 0.03125, %v2434_v41 }
0x1437   :  { %v2431_v39 = vpop.xlane.xlu1 %2430 }
0x1438   :  { %v2438_v43 = vadd.f32 1e-12, %v2436_v42  ;;  %v2435_v44 = vmul.f32 0.03125, %v2431_v39 }
0x143a   :  { %3167 = vrsqrt.f32 %v2438_v43  ;;  %v2437_v45 = vadd.f32 1e-12, %v2435_v44 }
0x143c   :  { %3169 = vrsqrt.f32 %v2437_v45 }
0x1447   :  { %v3168_v46 = vpop.eup %3167 }
0x1448   :  { %v2442_v48 = vmul.f32 %v3168_v46, %v2426_v51 }
0x1449   :  { %v3170_v49 = vpop.eup %3169 }
0x144a   :  { %v2441_v54 = vmul.f32 %v3170_v49, %v2425_v29  ;;  %v2450_v55 = vmul.f32 %v2756_v47, %v2442_v48 }
0x144c   :  { %v2449_v56 = vmul.f32 %v2756_v47, %v2441_v54  ;;  %v2458_v57 = vadd.f32 %v2757_v50, %v2450_v55 }
0x144e   :  { %v2457_v58 = vadd.f32 %v2757_v50, %v2449_v56  ;;  %v2460_v59 = vrot.slane %v2458_v57, 7 }
0x1450   :  { %v2463_v61 = vsel %vm2462_vm5, %v2457_v58, %v2460_v59 }
0x1451   :  { %3064 = vmatmul.mubr.msk.f32.vlgmr.msra.gmra.mxu1 %vm73_vm0, %v2463_v61 }
0x1452   :  { %3067 = vmatpush3.msra.mxu1 %v2564_v60  ;;  %3098 = vmatprep.mubr.msk.f32.mxu1 %vm3218_vm1, %v3217_v34 }
0x1453   :  { %3068 = vmatprep.subr.mxu1 %v3217_v34 }
0x1454   :  { %3069 = vmatpush3.msra.mxu1 %v2563_v62 }
0x1455   :  { %3070 = vmatprep.subr.mxu1 %v3217_v34 }
0x1456   :  { %3071 = vmatpush3.msra.mxu1 %v2562_v0 }
0x1457   :  { %3072 = vmatprep.subr.mxu1 %v3217_v34 }
0x1458   :  { %3073 = vmatpush3.msra.mxu1 %v2561_v1 }
0x1459   :  { %3074 = vmatprep.subr.mxu1 %v3217_v34 }
0x145a   :  { %3075 = vmatpush3.msra.mxu1 %v2560_v2 }
0x145b   :  { %3076 = vmatprep.subr.mxu1 %v3217_v34 }
0x145c   :  { %3077 = vmatpush3.msra.mxu1 %v2559_v3 }
0x145d   :  { %3078 = vmatprep.subr.mxu1 %v3217_v34 }
0x145e   :  { %3079 = vmatpush3.msra.mxu1 %v2558_v4 }
0x145f   :  { %3080 = vmatprep.subr.mxu1 %v3217_v34 }
0x1460   :  { %3081 = vmatpush3.msra.mxu1 %v2557_v5 }
0x1461   :  { %3082 = vmatprep.subr.mxu1 %v3217_v34 }
0x1462   :  { %3083 = vmatpush3.msra.mxu1 %v2556_v6 }
0x1463   :  { %3084 = vmatprep.subr.mxu1 %v3217_v34 }
0x1464   :  { %3085 = vmatpush3.msra.mxu1 %v2555_v7 }
0x1465   :  { %3086 = vmatprep.subr.mxu1 %v3217_v34 }
0x1466   :  { %3087 = vmatpush3.msra.mxu1 %v2554_v8 }
0x1467   :  { %3088 = vmatprep.subr.mxu1 %v3217_v34 }
0x1468   :  { %3089 = vmatpush3.msra.mxu1 %v2553_v9 }
0x1469   :  { %3090 = vmatprep.subr.mxu1 %v3217_v34 }
0x146a   :  { %3091 = vmatpush3.msra.mxu1 %v2552_v10 }
0x146b   :  { %3092 = vmatprep.subr.mxu1 %v3217_v34 }
0x146c   :  { %3093 = vmatpush3.msra.mxu1 %v2551_v11 }
0x146d   :  { %3094 = vmatprep.subr.mxu1 %v3217_v34 }
0x146e   :  { %3095 = vmatpush3.msra.mxu1 %v2550_v12 }
0x146f   :  { %3096 = vmatprep.subr.mxu1 %v3217_v34 }
0x1470   :  { %3097 = vmatpush3.msra.mxu1 %v2549_v13 }
0x1511   :  { %v2544_v15 = vpop.f32.mrf.mxu1 }
0x1512   :  { %v2545_v16 = vadd.f32 %v2758_v14, %v2544_v15 }
0x1513   :  { %v3065_v17 = vpop.f32.mrf.mxu1 }
0x1514   :  { %3171 = vtanh.f32 %v2545_v16 }
0x1521   :  { %v3172_v18 = vpop.eup %3171 }
0x1522   :  { %2642 = vst [vmem:[#allocation2] sm:$0x3] %v3172_v18  ;;  %3099 = vmatmul.mubr.f32.vlgmr.msra.gmra.mxu1 %v3172_v18 }
0x1523   :  { %3184 = shalt.err (!%p3181_p4)
}
0x1524   :  { %2653 = dma.vmem_to_hbm [thread:$0]  %s2651_s30, 32, %s3857_s20, [#allocation3]   ;;  %v2760_v34 = vld [vmem:[%s3856_s19] ss:$0 sm:$0xff] }
0x1525   :  { %s3226_s12 = smov [#allocation4]  }
0x1526   :  { %s2660_s13 = sshll.u32 %s3226_s12, 4  ;;  %s2661_s13 = int_to_ptr.vmem [resolvable:$true] %s2660_s13 }
0x1527   :  { %s3193_s2 = scalar_lea.vmem %s2661_s13, 32  ;;  %p3198_p6 = scmp.lt.s32.totalorder %s2661_s13, %s2661_s13 }
0x1528   :  { %p3194_p5 = scmp.ne.s32.totalorder %s2661_s13, %s3193_s2  ;;  %p3199_p7 = scmp.lt.s32.totalorder %s3193_s2, %s3193_s2 }
0x152a   :  { %p3200_p8 = por %p3199_p7, %p3198_p6 }
0x152c   :  { %p3201_p9 = pnand %p3200_p8, %p3194_p5 }
0x15e2   :  { %v2638_v19 = vpop.f32.mrf.mxu1 }
0x15e3   :  { %v2639_v20 = vadd.f32 %v2760_v34, %v2638_v19 }
0x15e4   :  { %v3100_v52 = vpop.f32.mrf.mxu1 }
0x15e5   :  { %2643 = vst [vmem:[#allocation4] sm:$0x3] %v2639_v20 }
0x15e6   :  { %3204 = shalt.err (!%p3201_p9)
}
0x15e7   :  { %2663 = dma.vmem_to_hbm [thread:$0]  %s2661_s13, 32, %s3858_s21, [#allocation5]  }
0x15e8   :  { %3213 = dma.done.wait [#allocation3], 32  }
0x15e9   :  { %3214 = vsyncadd [#allocation3], 4294967264 }
0x15ea   :  { %3215 = dma.done.wait [#allocation5], 32  }
0x15eb   :  { %3216 = vsyncadd [#allocation5], 4294967264 }
0x15ec   :  { %2670 = vsyncpa [#allocation3], 1 }
0x15ed   :  { %2671 = vsyncpa [#allocation5], 1 }

</bundles_post_ra>
